<compile_context>
chip_gen: v6e
topology: v6e:2x2x1
jax: 0.10.0
libtpu: 0.0.40
codegen_flags: <defaults>
</compile_context>

<pallas_src>
import functools
import math

import jax
import jax.numpy as jnp
from jax.experimental import pallas as pl
from jax.experimental.pallas import tpu as pltpu

# ---------------- config ----------------
BATCH = 2
IN_CHANS = 3
IMG = 16
PATCH = 8
EMBED_DIM = 32            # backbone feature_dim (small stand-in for 192/384/768)
NUM_HEADS = 2
HEAD_DIM = EMBED_DIM // NUM_HEADS
DEPTH = 2
MLP_DIM = 4 * EMBED_DIM
LN_EPS = 1e-6
N_PATCHES = (IMG // PATCH) ** 2
NUM_TOKENS = N_PATCHES + 1
_INV_SQRT2 = 1.0 / math.sqrt(2.0)


# ---------------- fused Pallas kernel (whole model, one invocation) ----------
def _vit_fused_kernel(
    patches_ref, mask_ref, add_ref,
    patch_w_ref, patch_b_ref,
    ln1_g_ref, ln1_b_ref, qkv_w_ref, qkv_b_ref, proj_w_ref, proj_b_ref,
    ln2_g_ref, ln2_b_ref, fc1_w_ref, fc1_b_ref, fc2_w_ref, fc2_b_ref,
    norm_g_ref, norm_b_ref, h1_w_ref, h1_b_ref, h2_w_ref, h2_b_ref,
    out_ref,
    x_s, qkv_s, attn_s, cls_s,
    *, batch, n_tok, depth, num_heads, head_dim,
):
    d = num_heads * head_dim
    scale = head_dim ** -0.5
    f32 = jnp.float32
    bf16 = jnp.bfloat16

    def mm(a, b):
        # MXU path: bf16 operands, f32 accumulation.
        return jnp.dot(a.astype(bf16), b.astype(bf16), preferred_element_type=f32)

    def ln(x, g, b):
        mu = jnp.mean(x, axis=-1, keepdims=True)
        var = jnp.mean(jnp.square(x - mu), axis=-1, keepdims=True)
        return (x - mu) * jax.lax.rsqrt(var + LN_EPS) * g + b

    def gelu(x):
        # exact GELU, matches torch.nn.GELU(approximate='none')
        return 0.5 * x * (1.0 + jax.lax.erf(x * _INV_SQRT2))

    # ---- patch embed + cls token + positional embedding (fused) ----
    # cls rows of `patches` are zero, mask=0 there; add_ref already carries
    # pos_embed (all rows) + cls_token (cls rows only).
    tokens = mm(patches_ref[...], patch_w_ref[...]) + patch_b_ref[...]
    x = tokens * mask_ref[...] + add_ref[...]                 # (B*N, D) f32
    # TODO(synk): pos_drop / attn_drop / proj_drop / drop_path are identity in
    # eval mode and therefore omitted.

    # ---- transformer blocks (statically unrolled, activations stay in VMEM) --
    for l in range(depth):
        # --- multi-head self attention ---
        h = ln(x, ln1_g_ref[l], ln1_b_ref[l])
        qkv_s[...] = mm(h, qkv_w_ref[l]) + qkv_b_ref[l]       # (B*N, 3D)
        for b in range(batch):
            r0 = b * n_tok
            for hh in range(num_heads):
                c0 = hh * head_dim
                q = qkv_s[r0:r0 + n_tok, c0:c0 + head_dim] * scale
                k = qkv_s[r0:r0 + n_tok, d + c0:d + c0 + head_dim]
                v = qkv_s[r0:r0 + n_tok, 2 * d + c0:2 * d + c0 + head_dim]
                s = jax.lax.dot_general(
                    q.astype(bf16), k.astype(bf16),
                    (((1,), (1,)), ((), ())), preferred_element_type=f32)
                s = s - jnp.max(s, axis=-1, keepdims=True)
                p = jnp.exp(s)
                p = p * pl.reciprocal(jnp.sum(p, axis=-1, keepdims=True),
                                      approx=True)
                attn_s[r0:r0 + n_tok, c0:c0 + head_dim] = mm(p, v)
        x = x + mm(attn_s[...], proj_w_ref[l]) + proj_b_ref[l]
        # --- MLP ---
        h = ln(x, ln2_g_ref[l], ln2_b_ref[l])
        h = gelu(mm(h, fc1_w_ref[l]) + fc1_b_ref[l])
        x = x + mm(h, fc2_w_ref[l]) + fc2_b_ref[l]

    # ---- final norm, cls-token pooling, custom head (fused) ----
    x_s[...] = ln(x, norm_g_ref[...], norm_b_ref[...])
    for b in range(batch):
        cls_s[b:b + 1, :] = x_s[b * n_tok:b * n_tok + 1, :]
    hd = gelu(mm(cls_s[...], h1_w_ref[...]) + h1_b_ref[...])  # (B, 10)
    out = mm(hd, h2_w_ref[...]) + h2_b_ref[...]               # (B, 1)
    out_ref[...] = out.astype(out_ref.dtype)


# ---------------- parameters (deterministic init) ----------------
def init_params(key):
    def nrm(k, shape, std=0.02):
        return std * jax.random.normal(k, shape, dtype=jnp.float32)

    keys = iter(jax.random.split(key, 32))
    D, M = EMBED_DIM, MLP_DIM
    cpp = IN_CHANS * PATCH * PATCH
    return {
        "patch_w": nrm(next(keys), (cpp, D)),
        "patch_b": nrm(next(keys), (1, D)),
        "cls_token": nrm(next(keys), (1, D)),
        "pos_embed": nrm(next(keys), (NUM_TOKENS, D)),
        "norm_g": jnp.ones((1, D), jnp.float32),
        "norm_b": jnp.zeros((1, D), jnp.float32),
        # custom head: Linear(feature_dim, 10) -> GELU -> Linear(10, 1)
        "head1_w": nrm(next(keys), (D, 10)),
        "head1_b": nrm(next(keys), (1, 10)),
        "head2_w": nrm(next(keys), (10, 1)),
        "head2_b": nrm(next(keys), (1, 1)),
        # per-block params stacked along a leading DEPTH axis
        "ln1_g": jnp.ones((DEPTH, 1, D), jnp.float32),
        "ln1_b": jnp.zeros((DEPTH, 1, D), jnp.float32),
        "qkv_w": nrm(next(keys), (DEPTH, D, 3 * D)),
        "qkv_b": nrm(next(keys), (DEPTH, 1, 3 * D)),
        "proj_w": nrm(next(keys), (DEPTH, D, D)),
        "proj_b": nrm(next(keys), (DEPTH, 1, D)),
        "ln2_g": jnp.ones((DEPTH, 1, D), jnp.float32),
        "ln2_b": jnp.zeros((DEPTH, 1, D), jnp.float32),
        "fc1_w": nrm(next(keys), (DEPTH, D, M)),
        "fc1_b": nrm(next(keys), (DEPTH, 1, M)),
        "fc2_w": nrm(next(keys), (DEPTH, M, D)),
        "fc2_b": nrm(next(keys), (DEPTH, 1, D)),
    }


# ---------------- forward pass ----------------
def vit_forward(x, params):
    """x: (B, C, H, W) NCHW float32 -> (B, 1)."""
    B, C, H, W = x.shape
    p = PATCH
    hp, wp = H // p, W // p
    n_patches = hp * wp
    n_tok = n_patches + 1
    D = EMBED_DIM
    cpp = C * p * p

    # TODO(synk): the NCHW -> (B, Np, C*p*p) im2col of the stride-p conv stays
    # as XLA layout glue; everything else runs inside the single fused kernel.
    patches = (x.reshape(B, C, hp, p, wp, p)
                 .transpose(0, 2, 4, 1, 3, 5)
                 .reshape(B, n_patches, cpp))
    # Zero row per batch at the cls-token slot so the kernel runs one
    # (B*N, cpp) @ (cpp, D) matmul and masks the cls rows afterwards.
    patches_ext = jnp.concatenate(
        [jnp.zeros((B, 1, cpp), patches.dtype), patches], axis=1
    ).reshape(B * n_tok, cpp)

    # mask = 1 on patch rows, 0 on cls rows; additive term = pos_embed (tiled
    # over batch) + cls_token on cls rows.
    mask = (jnp.arange(B * n_tok) % n_tok != 0).astype(jnp.float32).reshape(-1, 1)
    add_term = (jnp.tile(params["pos_embed"], (B, 1))
                + (1.0 - mask) * params["cls_token"])

    bf16 = jnp.bfloat16
    args = [
        patches_ext, mask, add_term,
        params["patch_w"].astype(bf16), params["patch_b"],
        params["ln1_g"], params["ln1_b"],
        params["qkv_w"].astype(bf16), params["qkv_b"],
        params["proj_w"].astype(bf16), params["proj_b"],
        params["ln2_g"], params["ln2_b"],
        params["fc1_w"].astype(bf16), params["fc1_b"],
        params["fc2_w"].astype(bf16), params["fc2_b"],
        params["norm_g"], params["norm_b"],
        params["head1_w"].astype(bf16), params["head1_b"],
        params["head2_w"].astype(bf16), params["head2_b"],
    ]

    kernel = functools.partial(
        _vit_fused_kernel,
        batch=B, n_tok=n_tok, depth=DEPTH,
        num_heads=NUM_HEADS, head_dim=HEAD_DIM)

    in_specs = [pl.BlockSpec(a.shape, lambda i, nd=a.ndim: (0,) * nd)
                for a in args]

    return pl.pallas_call(
        kernel,
        out_shape=jax.ShapeDtypeStruct((B, 1), jnp.float32),
        grid=(1,),
        in_specs=in_specs,
        out_specs=pl.BlockSpec((B, 1), lambda i: (0, 0)),
        scratch_shapes=[
            pltpu.VMEM((B * n_tok, D), jnp.float32),        # x_s   (final LN)
            pltpu.VMEM((B * n_tok, 3 * D), jnp.float32),    # qkv_s
            pltpu.VMEM((B * n_tok, D), jnp.float32),        # attn_s
            pltpu.VMEM((B, D), jnp.float32),                # cls_s
        ],
    )(*args)


if __name__ == "__main__":
    key = jax.random.PRNGKey(0)
    pkey, xkey = jax.random.split(key)
    params = init_params(pkey)
    x = jax.random.normal(xkey, (BATCH, IN_CHANS, IMG, IMG), dtype=jnp.float32)
    out = jax.jit(vit_forward)(x, params)
    out = jax.block_until_ready(out)
    assert out.shape == (BATCH, 1), out.shape
    assert bool(jnp.all(jnp.isfinite(out)))
    print("KERNEL_OK")
</pallas_src>

<mosaic_0001>
module attributes {stable_mosaic.version = 11 : i64} {
  func.func @_vit_fused_kernel(%arg0: i32, %arg1: memref<10x192xf32, #tpu.memory_space<vmem>>, %arg2: memref<10x1xf32, #tpu.memory_space<vmem>>, %arg3: memref<10x32xf32, #tpu.memory_space<vmem>>, %arg4: memref<192x32xbf16, #tpu.memory_space<vmem>>, %arg5: memref<1x32xf32, #tpu.memory_space<vmem>>, %arg6: memref<2x1x32xf32, #tpu.memory_space<vmem>>, %arg7: memref<2x1x32xf32, #tpu.memory_space<vmem>>, %arg8: memref<2x32x96xbf16, #tpu.memory_space<vmem>>, %arg9: memref<2x1x96xf32, #tpu.memory_space<vmem>>, %arg10: memref<2x32x32xbf16, #tpu.memory_space<vmem>>, %arg11: memref<2x1x32xf32, #tpu.memory_space<vmem>>, %arg12: memref<2x1x32xf32, #tpu.memory_space<vmem>>, %arg13: memref<2x1x32xf32, #tpu.memory_space<vmem>>, %arg14: memref<2x32x128xbf16, #tpu.memory_space<vmem>>, %arg15: memref<2x1x128xf32, #tpu.memory_space<vmem>>, %arg16: memref<2x128x32xbf16, #tpu.memory_space<vmem>>, %arg17: memref<2x1x32xf32, #tpu.memory_space<vmem>>, %arg18: memref<1x32xf32, #tpu.memory_space<vmem>>, %arg19: memref<1x32xf32, #tpu.memory_space<vmem>>, %arg20: memref<32x10xbf16, #tpu.memory_space<vmem>>, %arg21: memref<1x10xf32, #tpu.memory_space<vmem>>, %arg22: memref<10x1xbf16, #tpu.memory_space<vmem>>, %arg23: memref<1x1xf32, #tpu.memory_space<vmem>>, %arg24: memref<2x1xf32, #tpu.memory_space<vmem>>, %arg25: memref<10x32xf32, #tpu.memory_space<vmem>>, %arg26: memref<10x96xf32, #tpu.memory_space<vmem>>, %arg27: memref<10x32xf32, #tpu.memory_space<vmem>>, %arg28: memref<2x32xf32, #tpu.memory_space<vmem>>) attributes {dimension_semantics = [#tpu.dimension_semantics<arbitrary>], iteration_bounds = array<i64: 1>, scalar_prefetch = 0 : i64, scratch_operands = 4 : i64, tpu.core_type = #tpu.core_type<tc>, window_params = [{pipeline_mode = #tpu.pipeline_mode<synchronous>, transform_indices = @transform_0, window_bounds = array<i64: 10, 192>}, {pipeline_mode = #tpu.pipeline_mode<synchronous>, transform_indices = @transform_1, window_bounds = array<i64: 10, 1>}, {pipeline_mode = #tpu.pipeline_mode<synchronous>, transform_indices = @transform_2, window_bounds = array<i64: 10, 32>}, {pipeline_mode = #tpu.pipeline_mode<synchronous>, transform_indices = @transform_3, window_bounds = array<i64: 192, 32>}, {pipeline_mode = #tpu.pipeline_mode<synchronous>, transform_indices = @transform_4, window_bounds = array<i64: 1, 32>}, {pipeline_mode = #tpu.pipeline_mode<synchronous>, transform_indices = @transform_5, window_bounds = array<i64: 2, 1, 32>}, {pipeline_mode = #tpu.pipeline_mode<synchronous>, transform_indices = @transform_6, window_bounds = array<i64: 2, 1, 32>}, {pipeline_mode = #tpu.pipeline_mode<synchronous>, transform_indices = @transform_7, window_bounds = array<i64: 2, 32, 96>}, {pipeline_mode = #tpu.pipeline_mode<synchronous>, transform_indices = @transform_8, window_bounds = array<i64: 2, 1, 96>}, {pipeline_mode = #tpu.pipeline_mode<synchronous>, transform_indices = @transform_9, window_bounds = array<i64: 2, 32, 32>}, {pipeline_mode = #tpu.pipeline_mode<synchronous>, transform_indices = @transform_10, window_bounds = array<i64: 2, 1, 32>}, {pipeline_mode = #tpu.pipeline_mode<synchronous>, transform_indices = @transform_11, window_bounds = array<i64: 2, 1, 32>}, {pipeline_mode = #tpu.pipeline_mode<synchronous>, transform_indices = @transform_12, window_bounds = array<i64: 2, 1, 32>}, {pipeline_mode = #tpu.pipeline_mode<synchronous>, transform_indices = @transform_13, window_bounds = array<i64: 2, 32, 128>}, {pipeline_mode = #tpu.pipeline_mode<synchronous>, transform_indices = @transform_14, window_bounds = array<i64: 2, 1, 128>}, {pipeline_mode = #tpu.pipeline_mode<synchronous>, transform_indices = @transform_15, window_bounds = array<i64: 2, 128, 32>}, {pipeline_mode = #tpu.pipeline_mode<synchronous>, transform_indices = @transform_16, window_bounds = array<i64: 2, 1, 32>}, {pipeline_mode = #tpu.pipeline_mode<synchronous>, transform_indices = @transform_17, window_bounds = array<i64: 1, 32>}, {pipeline_mode = #tpu.pipeline_mode<synchronous>, transform_indices = @transform_18, window_bounds = array<i64: 1, 32>}, {pipeline_mode = #tpu.pipeline_mode<synchronous>, transform_indices = @transform_19, window_bounds = array<i64: 32, 10>}, {pipeline_mode = #tpu.pipeline_mode<synchronous>, transform_indices = @transform_20, window_bounds = array<i64: 1, 10>}, {pipeline_mode = #tpu.pipeline_mode<synchronous>, transform_indices = @transform_21, window_bounds = array<i64: 10, 1>}, {pipeline_mode = #tpu.pipeline_mode<synchronous>, transform_indices = @transform_22, window_bounds = array<i64: 1, 1>}, {pipeline_mode = #tpu.pipeline_mode<synchronous>, transform_indices = @transform_23, window_bounds = array<i64: 2, 1>}]} {
    %c0 = arith.constant 0 : index
    %c0_0 = arith.constant 0 : index
    %0 = vector.load %arg1[%c0, %c0_0] : memref<10x192xf32, #tpu.memory_space<vmem>>, vector<10x192xf32>
    %c0_1 = arith.constant 0 : index
    %c0_2 = arith.constant 0 : index
    %1 = vector.load %arg4[%c0_1, %c0_2] : memref<192x32xbf16, #tpu.memory_space<vmem>>, vector<192x32xbf16>
    %2 = arith.truncf %0 : vector<10x192xf32> to vector<10x192xbf16>
    %cst = arith.constant dense<0.000000e+00> : vector<10x32xf32>
    %3 = tpu.matmul %2, %1, %cst {dimension_numbers = #tpu.dot_dimension_numbers<[1], [0], [0], [1], [0, 0, 1, 1], [], []>} : vector<10x192xbf16>, vector<192x32xbf16>, vector<10x32xf32> -> vector<10x32xf32>
    %c0_3 = arith.constant 0 : index
    %c0_4 = arith.constant 0 : index
    %4 = vector.load %arg5[%c0_3, %c0_4] : memref<1x32xf32, #tpu.memory_space<vmem>>, vector<1x32xf32>
    %5 = vector.broadcast %4 : vector<1x32xf32> to vector<10x32xf32>
    %6 = arith.addf %3, %5 : vector<10x32xf32>
    %c0_5 = arith.constant 0 : index
    %c0_6 = arith.constant 0 : index
    %7 = vector.load %arg2[%c0_5, %c0_6] : memref<10x1xf32, #tpu.memory_space<vmem>>, vector<10x1xf32>
    %8 = vector.broadcast %7 : vector<10x1xf32> to vector<10x32xf32>
    %9 = arith.mulf %6, %8 : vector<10x32xf32>
    %c0_7 = arith.constant 0 : index
    %c0_8 = arith.constant 0 : index
    %10 = vector.load %arg3[%c0_7, %c0_8] : memref<10x32xf32, #tpu.memory_space<vmem>>, vector<10x32xf32>
    %11 = arith.addf %9, %10 : vector<10x32xf32>
    %c0_9 = arith.constant 0 : index
    %c0_10 = arith.constant 0 : index
    %c0_11 = arith.constant 0 : index
    %12 = vector.load %arg6[%c0_9, %c0_10, %c0_11] : memref<2x1x32xf32, #tpu.memory_space<vmem>>, vector<1x1x32xf32>
    %13 = vector.shape_cast %12 : vector<1x1x32xf32> to vector<1x32xf32>
    %c0_12 = arith.constant 0 : index
    %c0_13 = arith.constant 0 : index
    %c0_14 = arith.constant 0 : index
    %14 = vector.load %arg7[%c0_12, %c0_13, %c0_14] : memref<2x1x32xf32, #tpu.memory_space<vmem>>, vector<1x1x32xf32>
    %15 = vector.shape_cast %14 : vector<1x1x32xf32> to vector<1x32xf32>
    %cst_15 = arith.constant dense<0.000000e+00> : vector<10xf32>
    %16 = vector.multi_reduction <add>, %11, %cst_15 [1] : vector<10x32xf32> to vector<10xf32>
    %17 = vector.shape_cast %16 : vector<10xf32> to vector<10x1xf32>
    %cst_16 = arith.constant 3.200000e+01 : f32
    %18 = vector.broadcast %cst_16 : f32 to vector<10x1xf32>
    %19 = arith.divf %17, %18 : vector<10x1xf32>
    %20 = vector.broadcast %19 : vector<10x1xf32> to vector<10x32xf32>
    %21 = arith.subf %11, %20 : vector<10x32xf32>
    %22 = arith.mulf %21, %21 : vector<10x32xf32>
    %cst_17 = arith.constant dense<0.000000e+00> : vector<10xf32>
    %23 = vector.multi_reduction <add>, %22, %cst_17 [1] : vector<10x32xf32> to vector<10xf32>
    %24 = vector.shape_cast %23 : vector<10xf32> to vector<10x1xf32>
    %cst_18 = arith.constant 3.200000e+01 : f32
    %25 = vector.broadcast %cst_18 : f32 to vector<10x1xf32>
    %26 = arith.divf %24, %25 : vector<10x1xf32>
    %27 = vector.broadcast %19 : vector<10x1xf32> to vector<10x32xf32>
    %28 = arith.subf %11, %27 : vector<10x32xf32>
    %cst_19 = arith.constant 9.99999997E-7 : f32
    %29 = vector.broadcast %cst_19 : f32 to vector<10x1xf32>
    %30 = arith.addf %26, %29 : vector<10x1xf32>
    %31 = math.rsqrt %30 : vector<10x1xf32>
    %32 = vector.broadcast %31 : vector<10x1xf32> to vector<10x32xf32>
    %33 = arith.mulf %28, %32 : vector<10x32xf32>
    %34 = vector.broadcast %13 : vector<1x32xf32> to vector<10x32xf32>
    %35 = arith.mulf %33, %34 : vector<10x32xf32>
    %36 = vector.broadcast %15 : vector<1x32xf32> to vector<10x32xf32>
    %37 = arith.addf %35, %36 : vector<10x32xf32>
    %c0_20 = arith.constant 0 : index
    %c0_21 = arith.constant 0 : index
    %c0_22 = arith.constant 0 : index
    %38 = vector.load %arg8[%c0_20, %c0_21, %c0_22] : memref<2x32x96xbf16, #tpu.memory_space<vmem>>, vector<1x32x96xbf16>
    %39 = vector.shape_cast %38 : vector<1x32x96xbf16> to vector<32x96xbf16>
    %40 = arith.truncf %37 : vector<10x32xf32> to vector<10x32xbf16>
    %cst_23 = arith.constant dense<0.000000e+00> : vector<10x96xf32>
    %41 = tpu.matmul %40, %39, %cst_23 {dimension_numbers = #tpu.dot_dimension_numbers<[1], [0], [0], [1], [0, 0, 1, 1], [], []>} : vector<10x32xbf16>, vector<32x96xbf16>, vector<10x96xf32> -> vector<10x96xf32>
    %c0_24 = arith.constant 0 : index
    %c0_25 = arith.constant 0 : index
    %c0_26 = arith.constant 0 : index
    %42 = vector.load %arg9[%c0_24, %c0_25, %c0_26] : memref<2x1x96xf32, #tpu.memory_space<vmem>>, vector<1x1x96xf32>
    %43 = vector.shape_cast %42 : vector<1x1x96xf32> to vector<1x96xf32>
    %44 = vector.broadcast %43 : vector<1x96xf32> to vector<10x96xf32>
    %45 = arith.addf %41, %44 : vector<10x96xf32>
    %c0_27 = arith.constant 0 : index
    %c0_28 = arith.constant 0 : index
    %46 = vector.load %arg26[%c0_27, %c0_28] : memref<10x96xf32, #tpu.memory_space<vmem>>, vector<10x96xf32>
    tpu.vector_store %arg26[%c0_27, %c0_28], %45 {strides = array<i32>} : memref<10x96xf32, #tpu.memory_space<vmem>>, vector<10x96xf32>,
    %c0_29 = arith.constant 0 : index
    %c0_30 = arith.constant 0 : index
    %47 = vector.load %arg26[%c0_29, %c0_30] : memref<10x96xf32, #tpu.memory_space<vmem>>, vector<5x16xf32>
    %cst_31 = arith.constant 2.500000e-01 : f32
    %48 = vector.broadcast %cst_31 : f32 to vector<5x16xf32>
    %49 = arith.mulf %47, %48 : vector<5x16xf32>
    %c0_32 = arith.constant 0 : index
    %c32 = arith.constant 32 : index
    %50 = vector.load %arg26[%c0_32, %c32] : memref<10x96xf32, #tpu.memory_space<vmem>>, vector<5x16xf32>
    %c0_33 = arith.constant 0 : index
    %c64 = arith.constant 64 : index
    %51 = vector.load %arg26[%c0_33, %c64] : memref<10x96xf32, #tpu.memory_space<vmem>>, vector<5x16xf32>
    %52 = arith.truncf %49 : vector<5x16xf32> to vector<5x16xbf16>
    %53 = arith.truncf %50 : vector<5x16xf32> to vector<5x16xbf16>
    %cst_34 = arith.constant dense<0.000000e+00> : vector<5x5xf32>
    %54 = tpu.matmul %52, %53, %cst_34 {dimension_numbers = #tpu.dot_dimension_numbers<[1], [1], [0], [0], [0, 0, 1, 0], [], []>} : vector<5x16xbf16>, vector<5x16xbf16>, vector<5x5xf32> -> vector<5x5xf32>
    %cst_35 = arith.constant dense<0xFF800000> : vector<5xf32>
    %55 = vector.multi_reduction <maximumf>, %54, %cst_35 [1] : vector<5x5xf32> to vector<5xf32>
    %56 = vector.shape_cast %55 : vector<5xf32> to vector<5x1xf32>
    %57 = vector.broadcast %56 : vector<5x1xf32> to vector<5x5xf32>
    %58 = arith.subf %54, %57 : vector<5x5xf32>
    %59 = math.exp %58 : vector<5x5xf32>
    %cst_36 = arith.constant dense<0.000000e+00> : vector<5xf32>
    %60 = vector.multi_reduction <add>, %59, %cst_36 [1] : vector<5x5xf32> to vector<5xf32>
    %61 = vector.shape_cast %60 : vector<5xf32> to vector<5x1xf32>
    %62 = tpu.reciprocal %61 {approx = true} : vector<5x1xf32> -> vector<5x1xf32>
    %63 = vector.broadcast %62 : vector<5x1xf32> to vector<5x5xf32>
    %64 = arith.mulf %59, %63 : vector<5x5xf32>
    %65 = arith.truncf %64 : vector<5x5xf32> to vector<5x5xbf16>
    %66 = arith.truncf %51 : vector<5x16xf32> to vector<5x16xbf16>
    %cst_37 = arith.constant dense<0.000000e+00> : vector<5x16xf32>
    %67 = tpu.matmul %65, %66, %cst_37 {dimension_numbers = #tpu.dot_dimension_numbers<[1], [0], [0], [1], [0, 0, 1, 1], [], []>} : vector<5x5xbf16>, vector<5x16xbf16>, vector<5x16xf32> -> vector<5x16xf32>
    %c0_38 = arith.constant 0 : index
    %c0_39 = arith.constant 0 : index
    %68 = vector.load %arg27[%c0_38, %c0_39] : memref<10x32xf32, #tpu.memory_space<vmem>>, vector<5x16xf32>
    tpu.vector_store %arg27[%c0_38, %c0_39], %67 {strides = array<i32>} : memref<10x32xf32, #tpu.memory_space<vmem>>, vector<5x16xf32>,
    %c0_40 = arith.constant 0 : index
    %c16 = arith.constant 16 : index
    %69 = vector.load %arg26[%c0_40, %c16] : memref<10x96xf32, #tpu.memory_space<vmem>>, vector<5x16xf32>
    %cst_41 = arith.constant 2.500000e-01 : f32
    %70 = vector.broadcast %cst_41 : f32 to vector<5x16xf32>
    %71 = arith.mulf %69, %70 : vector<5x16xf32>
    %c0_42 = arith.constant 0 : index
    %c48 = arith.constant 48 : index
    %72 = vector.load %arg26[%c0_42, %c48] : memref<10x96xf32, #tpu.memory_space<vmem>>, vector<5x16xf32>
    %c0_43 = arith.constant 0 : index
    %c80 = arith.constant 80 : index
    %73 = vector.load %arg26[%c0_43, %c80] : memref<10x96xf32, #tpu.memory_space<vmem>>, vector<5x16xf32>
    %74 = arith.truncf %71 : vector<5x16xf32> to vector<5x16xbf16>
    %75 = arith.truncf %72 : vector<5x16xf32> to vector<5x16xbf16>
    %cst_44 = arith.constant dense<0.000000e+00> : vector<5x5xf32>
    %76 = tpu.matmul %74, %75, %cst_44 {dimension_numbers = #tpu.dot_dimension_numbers<[1], [1], [0], [0], [0, 0, 1, 0], [], []>} : vector<5x16xbf16>, vector<5x16xbf16>, vector<5x5xf32> -> vector<5x5xf32>
    %cst_45 = arith.constant dense<0xFF800000> : vector<5xf32>
    %77 = vector.multi_reduction <maximumf>, %76, %cst_45 [1] : vector<5x5xf32> to vector<5xf32>
    %78 = vector.shape_cast %77 : vector<5xf32> to vector<5x1xf32>
    %79 = vector.broadcast %78 : vector<5x1xf32> to vector<5x5xf32>
    %80 = arith.subf %76, %79 : vector<5x5xf32>
    %81 = math.exp %80 : vector<5x5xf32>
    %cst_46 = arith.constant dense<0.000000e+00> : vector<5xf32>
    %82 = vector.multi_reduction <add>, %81, %cst_46 [1] : vector<5x5xf32> to vector<5xf32>
    %83 = vector.shape_cast %82 : vector<5xf32> to vector<5x1xf32>
    %84 = tpu.reciprocal %83 {approx = true} : vector<5x1xf32> -> vector<5x1xf32>
    %85 = vector.broadcast %84 : vector<5x1xf32> to vector<5x5xf32>
    %86 = arith.mulf %81, %85 : vector<5x5xf32>
    %87 = arith.truncf %86 : vector<5x5xf32> to vector<5x5xbf16>
    %88 = arith.truncf %73 : vector<5x16xf32> to vector<5x16xbf16>
    %cst_47 = arith.constant dense<0.000000e+00> : vector<5x16xf32>
    %89 = tpu.matmul %87, %88, %cst_47 {dimension_numbers = #tpu.dot_dimension_numbers<[1], [0], [0], [1], [0, 0, 1, 1], [], []>} : vector<5x5xbf16>, vector<5x16xbf16>, vector<5x16xf32> -> vector<5x16xf32>
    %c0_48 = arith.constant 0 : index
    %c16_49 = arith.constant 16 : index
    %90 = vector.load %arg27[%c0_48, %c16_49] : memref<10x32xf32, #tpu.memory_space<vmem>>, vector<5x16xf32>
    tpu.vector_store %arg27[%c0_48, %c16_49], %89 {strides = array<i32>} : memref<10x32xf32, #tpu.memory_space<vmem>>, vector<5x16xf32>,
    %c5 = arith.constant 5 : index
    %c0_50 = arith.constant 0 : index
    %91 = vector.load %arg26[%c5, %c0_50] : memref<10x96xf32, #tpu.memory_space<vmem>>, vector<5x16xf32>
    %cst_51 = arith.constant 2.500000e-01 : f32
    %92 = vector.broadcast %cst_51 : f32 to vector<5x16xf32>
    %93 = arith.mulf %91, %92 : vector<5x16xf32>
    %c5_52 = arith.constant 5 : index
    %c32_53 = arith.constant 32 : index
    %94 = vector.load %arg26[%c5_52, %c32_53] : memref<10x96xf32, #tpu.memory_space<vmem>>, vector<5x16xf32>
    %c5_54 = arith.constant 5 : index
    %c64_55 = arith.constant 64 : index
    %95 = vector.load %arg26[%c5_54, %c64_55] : memref<10x96xf32, #tpu.memory_space<vmem>>, vector<5x16xf32>
    %96 = arith.truncf %93 : vector<5x16xf32> to vector<5x16xbf16>
    %97 = arith.truncf %94 : vector<5x16xf32> to vector<5x16xbf16>
    %cst_56 = arith.constant dense<0.000000e+00> : vector<5x5xf32>
    %98 = tpu.matmul %96, %97, %cst_56 {dimension_numbers = #tpu.dot_dimension_numbers<[1], [1], [0], [0], [0, 0, 1, 0], [], []>} : vector<5x16xbf16>, vector<5x16xbf16>, vector<5x5xf32> -> vector<5x5xf32>
    %cst_57 = arith.constant dense<0xFF800000> : vector<5xf32>
    %99 = vector.multi_reduction <maximumf>, %98, %cst_57 [1] : vector<5x5xf32> to vector<5xf32>
    %100 = vector.shape_cast %99 : vector<5xf32> to vector<5x1xf32>
    %101 = vector.broadcast %100 : vector<5x1xf32> to vector<5x5xf32>
    %102 = arith.subf %98, %101 : vector<5x5xf32>
    %103 = math.exp %102 : vector<5x5xf32>
    %cst_58 = arith.constant dense<0.000000e+00> : vector<5xf32>
    %104 = vector.multi_reduction <add>, %103, %cst_58 [1] : vector<5x5xf32> to vector<5xf32>
    %105 = vector.shape_cast %104 : vector<5xf32> to vector<5x1xf32>
    %106 = tpu.reciprocal %105 {approx = true} : vector<5x1xf32> -> vector<5x1xf32>
    %107 = vector.broadcast %106 : vector<5x1xf32> to vector<5x5xf32>
    %108 = arith.mulf %103, %107 : vector<5x5xf32>
    %109 = arith.truncf %108 : vector<5x5xf32> to vector<5x5xbf16>
    %110 = arith.truncf %95 : vector<5x16xf32> to vector<5x16xbf16>
    %cst_59 = arith.constant dense<0.000000e+00> : vector<5x16xf32>
    %111 = tpu.matmul %109, %110, %cst_59 {dimension_numbers = #tpu.dot_dimension_numbers<[1], [0], [0], [1], [0, 0, 1, 1], [], []>} : vector<5x5xbf16>, vector<5x16xbf16>, vector<5x16xf32> -> vector<5x16xf32>
    %c5_60 = arith.constant 5 : index
    %c0_61 = arith.constant 0 : index
    %112 = vector.load %arg27[%c5_60, %c0_61] : memref<10x32xf32, #tpu.memory_space<vmem>>, vector<5x16xf32>
    tpu.vector_store %arg27[%c5_60, %c0_61], %111 {strides = array<i32>} : memref<10x32xf32, #tpu.memory_space<vmem>>, vector<5x16xf32>,
    %c5_62 = arith.constant 5 : index
    %c16_63 = arith.constant 16 : index
    %113 = vector.load %arg26[%c5_62, %c16_63] : memref<10x96xf32, #tpu.memory_space<vmem>>, vector<5x16xf32>
    %cst_64 = arith.constant 2.500000e-01 : f32
    %114 = vector.broadcast %cst_64 : f32 to vector<5x16xf32>
    %115 = arith.mulf %113, %114 : vector<5x16xf32>
    %c5_65 = arith.constant 5 : index
    %c48_66 = arith.constant 48 : index
    %116 = vector.load %arg26[%c5_65, %c48_66] : memref<10x96xf32, #tpu.memory_space<vmem>>, vector<5x16xf32>
    %c5_67 = arith.constant 5 : index
    %c80_68 = arith.constant 80 : index
    %117 = vector.load %arg26[%c5_67, %c80_68] : memref<10x96xf32, #tpu.memory_space<vmem>>, vector<5x16xf32>
    %118 = arith.truncf %115 : vector<5x16xf32> to vector<5x16xbf16>
    %119 = arith.truncf %116 : vector<5x16xf32> to vector<5x16xbf16>
    %cst_69 = arith.constant dense<0.000000e+00> : vector<5x5xf32>
    %120 = tpu.matmul %118, %119, %cst_69 {dimension_numbers = #tpu.dot_dimension_numbers<[1], [1], [0], [0], [0, 0, 1, 0], [], []>} : vector<5x16xbf16>, vector<5x16xbf16>, vector<5x5xf32> -> vector<5x5xf32>
    %cst_70 = arith.constant dense<0xFF800000> : vector<5xf32>
    %121 = vector.multi_reduction <maximumf>, %120, %cst_70 [1] : vector<5x5xf32> to vector<5xf32>
    %122 = vector.shape_cast %121 : vector<5xf32> to vector<5x1xf32>
    %123 = vector.broadcast %122 : vector<5x1xf32> to vector<5x5xf32>
    %124 = arith.subf %120, %123 : vector<5x5xf32>
    %125 = math.exp %124 : vector<5x5xf32>
    %cst_71 = arith.constant dense<0.000000e+00> : vector<5xf32>
    %126 = vector.multi_reduction <add>, %125, %cst_71 [1] : vector<5x5xf32> to vector<5xf32>
    %127 = vector.shape_cast %126 : vector<5xf32> to vector<5x1xf32>
    %128 = tpu.reciprocal %127 {approx = true} : vector<5x1xf32> -> vector<5x1xf32>
    %129 = vector.broadcast %128 : vector<5x1xf32> to vector<5x5xf32>
    %130 = arith.mulf %125, %129 : vector<5x5xf32>
    %131 = arith.truncf %130 : vector<5x5xf32> to vector<5x5xbf16>
    %132 = arith.truncf %117 : vector<5x16xf32> to vector<5x16xbf16>
    %cst_72 = arith.constant dense<0.000000e+00> : vector<5x16xf32>
    %133 = tpu.matmul %131, %132, %cst_72 {dimension_numbers = #tpu.dot_dimension_numbers<[1], [0], [0], [1], [0, 0, 1, 1], [], []>} : vector<5x5xbf16>, vector<5x16xbf16>, vector<5x16xf32> -> vector<5x16xf32>
    %c5_73 = arith.constant 5 : index
    %c16_74 = arith.constant 16 : index
    %134 = vector.load %arg27[%c5_73, %c16_74] : memref<10x32xf32, #tpu.memory_space<vmem>>, vector<5x16xf32>
    tpu.vector_store %arg27[%c5_73, %c16_74], %133 {strides = array<i32>} : memref<10x32xf32, #tpu.memory_space<vmem>>, vector<5x16xf32>,
    %c0_75 = arith.constant 0 : index
    %c0_76 = arith.constant 0 : index
    %135 = vector.load %arg27[%c0_75, %c0_76] : memref<10x32xf32, #tpu.memory_space<vmem>>, vector<10x32xf32>
    %c0_77 = arith.constant 0 : index
    %c0_78 = arith.constant 0 : index
    %c0_79 = arith.constant 0 : index
    %136 = vector.load %arg10[%c0_77, %c0_78, %c0_79] : memref<2x32x32xbf16, #tpu.memory_space<vmem>>, vector<1x32x32xbf16>
    %137 = vector.shape_cast %136 : vector<1x32x32xbf16> to vector<32x32xbf16>
    %138 = arith.truncf %135 : vector<10x32xf32> to vector<10x32xbf16>
    %cst_80 = arith.constant dense<0.000000e+00> : vector<10x32xf32>
    %139 = tpu.matmul %138, %137, %cst_80 {dimension_numbers = #tpu.dot_dimension_numbers<[1], [0], [0], [1], [0, 0, 1, 1], [], []>} : vector<10x32xbf16>, vector<32x32xbf16>, vector<10x32xf32> -> vector<10x32xf32>
    %140 = arith.addf %11, %139 : vector<10x32xf32>
    %c0_81 = arith.constant 0 : index
    %c0_82 = arith.constant 0 : index
    %c0_83 = arith.constant 0 : index
    %141 = vector.load %arg11[%c0_81, %c0_82, %c0_83] : memref<2x1x32xf32, #tpu.memory_space<vmem>>, vector<1x1x32xf32>
    %142 = vector.shape_cast %141 : vector<1x1x32xf32> to vector<1x32xf32>
    %143 = vector.broadcast %142 : vector<1x32xf32> to vector<10x32xf32>
    %144 = arith.addf %140, %143 : vector<10x32xf32>
    %c0_84 = arith.constant 0 : index
    %c0_85 = arith.constant 0 : index
    %c0_86 = arith.constant 0 : index
    %145 = vector.load %arg12[%c0_84, %c0_85, %c0_86] : memref<2x1x32xf32, #tpu.memory_space<vmem>>, vector<1x1x32xf32>
    %146 = vector.shape_cast %145 : vector<1x1x32xf32> to vector<1x32xf32>
    %c0_87 = arith.constant 0 : index
    %c0_88 = arith.constant 0 : index
    %c0_89 = arith.constant 0 : index
    %147 = vector.load %arg13[%c0_87, %c0_88, %c0_89] : memref<2x1x32xf32, #tpu.memory_space<vmem>>, vector<1x1x32xf32>
    %148 = vector.shape_cast %147 : vector<1x1x32xf32> to vector<1x32xf32>
    %cst_90 = arith.constant dense<0.000000e+00> : vector<10xf32>
    %149 = vector.multi_reduction <add>, %144, %cst_90 [1] : vector<10x32xf32> to vector<10xf32>
    %150 = vector.shape_cast %149 : vector<10xf32> to vector<10x1xf32>
    %cst_91 = arith.constant 3.200000e+01 : f32
    %151 = vector.broadcast %cst_91 : f32 to vector<10x1xf32>
    %152 = arith.divf %150, %151 : vector<10x1xf32>
    %153 = vector.broadcast %152 : vector<10x1xf32> to vector<10x32xf32>
    %154 = arith.subf %144, %153 : vector<10x32xf32>
    %155 = arith.mulf %154, %154 : vector<10x32xf32>
    %cst_92 = arith.constant dense<0.000000e+00> : vector<10xf32>
    %156 = vector.multi_reduction <add>, %155, %cst_92 [1] : vector<10x32xf32> to vector<10xf32>
    %157 = vector.shape_cast %156 : vector<10xf32> to vector<10x1xf32>
    %cst_93 = arith.constant 3.200000e+01 : f32
    %158 = vector.broadcast %cst_93 : f32 to vector<10x1xf32>
    %159 = arith.divf %157, %158 : vector<10x1xf32>
    %160 = vector.broadcast %152 : vector<10x1xf32> to vector<10x32xf32>
    %161 = arith.subf %144, %160 : vector<10x32xf32>
    %cst_94 = arith.constant 9.99999997E-7 : f32
    %162 = vector.broadcast %cst_94 : f32 to vector<10x1xf32>
    %163 = arith.addf %159, %162 : vector<10x1xf32>
    %164 = math.rsqrt %163 : vector<10x1xf32>
    %165 = vector.broadcast %164 : vector<10x1xf32> to vector<10x32xf32>
    %166 = arith.mulf %161, %165 : vector<10x32xf32>
    %167 = vector.broadcast %146 : vector<1x32xf32> to vector<10x32xf32>
    %168 = arith.mulf %166, %167 : vector<10x32xf32>
    %169 = vector.broadcast %148 : vector<1x32xf32> to vector<10x32xf32>
    %170 = arith.addf %168, %169 : vector<10x32xf32>
    %c0_95 = arith.constant 0 : index
    %c0_96 = arith.constant 0 : index
    %c0_97 = arith.constant 0 : index
    %171 = vector.load %arg14[%c0_95, %c0_96, %c0_97] : memref<2x32x128xbf16, #tpu.memory_space<vmem>>, vector<1x32x128xbf16>
    %172 = vector.shape_cast %171 : vector<1x32x128xbf16> to vector<32x128xbf16>
    %173 = arith.truncf %170 : vector<10x32xf32> to vector<10x32xbf16>
    %cst_98 = arith.constant dense<0.000000e+00> : vector<10x128xf32>
    %174 = tpu.matmul %173, %172, %cst_98 {dimension_numbers = #tpu.dot_dimension_numbers<[1], [0], [0], [1], [0, 0, 1, 1], [], []>} : vector<10x32xbf16>, vector<32x128xbf16>, vector<10x128xf32> -> vector<10x128xf32>
    %c0_99 = arith.constant 0 : index
    %c0_100 = arith.constant 0 : index
    %c0_101 = arith.constant 0 : index
    %175 = vector.load %arg15[%c0_99, %c0_100, %c0_101] : memref<2x1x128xf32, #tpu.memory_space<vmem>>, vector<1x1x128xf32>
    %176 = vector.shape_cast %175 : vector<1x1x128xf32> to vector<1x128xf32>
    %177 = vector.broadcast %176 : vector<1x128xf32> to vector<10x128xf32>
    %178 = arith.addf %174, %177 : vector<10x128xf32>
    %cst_102 = arith.constant 5.000000e-01 : f32
    %179 = vector.broadcast %cst_102 : f32 to vector<10x128xf32>
    %180 = arith.mulf %179, %178 : vector<10x128xf32>
    %cst_103 = arith.constant 0.707106769 : f32
    %181 = vector.broadcast %cst_103 : f32 to vector<10x128xf32>
    %182 = arith.mulf %178, %181 : vector<10x128xf32>
    %183 = math.erf %182 : vector<10x128xf32>
    %cst_104 = arith.constant 1.000000e+00 : f32
    %184 = vector.broadcast %cst_104 : f32 to vector<10x128xf32>
    %185 = arith.addf %184, %183 : vector<10x128xf32>
    %186 = arith.mulf %180, %185 : vector<10x128xf32>
    %c0_105 = arith.constant 0 : index
    %c0_106 = arith.constant 0 : index
    %c0_107 = arith.constant 0 : index
    %187 = vector.load %arg16[%c0_105, %c0_106, %c0_107] : memref<2x128x32xbf16, #tpu.memory_space<vmem>>, vector<1x128x32xbf16>
    %188 = vector.shape_cast %187 : vector<1x128x32xbf16> to vector<128x32xbf16>
    %189 = arith.truncf %186 : vector<10x128xf32> to vector<10x128xbf16>
    %cst_108 = arith.constant dense<0.000000e+00> : vector<10x32xf32>
    %190 = tpu.matmul %189, %188, %cst_108 {dimension_numbers = #tpu.dot_dimension_numbers<[1], [0], [0], [1], [0, 0, 1, 1], [], []>} : vector<10x128xbf16>, vector<128x32xbf16>, vector<10x32xf32> -> vector<10x32xf32>
    %191 = arith.addf %144, %190 : vector<10x32xf32>
    %c0_109 = arith.constant 0 : index
    %c0_110 = arith.constant 0 : index
    %c0_111 = arith.constant 0 : index
    %192 = vector.load %arg17[%c0_109, %c0_110, %c0_111] : memref<2x1x32xf32, #tpu.memory_space<vmem>>, vector<1x1x32xf32>
    %193 = vector.shape_cast %192 : vector<1x1x32xf32> to vector<1x32xf32>
    %194 = vector.broadcast %193 : vector<1x32xf32> to vector<10x32xf32>
    %195 = arith.addf %191, %194 : vector<10x32xf32>
    %c1 = arith.constant 1 : index
    %c0_112 = arith.constant 0 : index
    %c0_113 = arith.constant 0 : index
    %196 = vector.load %arg6[%c1, %c0_112, %c0_113] : memref<2x1x32xf32, #tpu.memory_space<vmem>>, vector<1x1x32xf32>
    %197 = vector.shape_cast %196 : vector<1x1x32xf32> to vector<1x32xf32>
    %c1_114 = arith.constant 1 : index
    %c0_115 = arith.constant 0 : index
    %c0_116 = arith.constant 0 : index
    %198 = vector.load %arg7[%c1_114, %c0_115, %c0_116] : memref<2x1x32xf32, #tpu.memory_space<vmem>>, vector<1x1x32xf32>
    %199 = vector.shape_cast %198 : vector<1x1x32xf32> to vector<1x32xf32>
    %cst_117 = arith.constant dense<0.000000e+00> : vector<10xf32>
    %200 = vector.multi_reduction <add>, %195, %cst_117 [1] : vector<10x32xf32> to vector<10xf32>
    %201 = vector.shape_cast %200 : vector<10xf32> to vector<10x1xf32>
    %cst_118 = arith.constant 3.200000e+01 : f32
    %202 = vector.broadcast %cst_118 : f32 to vector<10x1xf32>
    %203 = arith.divf %201, %202 : vector<10x1xf32>
    %204 = vector.broadcast %203 : vector<10x1xf32> to vector<10x32xf32>
    %205 = arith.subf %195, %204 : vector<10x32xf32>
    %206 = arith.mulf %205, %205 : vector<10x32xf32>
    %cst_119 = arith.constant dense<0.000000e+00> : vector<10xf32>
    %207 = vector.multi_reduction <add>, %206, %cst_119 [1] : vector<10x32xf32> to vector<10xf32>
    %208 = vector.shape_cast %207 : vector<10xf32> to vector<10x1xf32>
    %cst_120 = arith.constant 3.200000e+01 : f32
    %209 = vector.broadcast %cst_120 : f32 to vector<10x1xf32>
    %210 = arith.divf %208, %209 : vector<10x1xf32>
    %211 = vector.broadcast %203 : vector<10x1xf32> to vector<10x32xf32>
    %212 = arith.subf %195, %211 : vector<10x32xf32>
    %cst_121 = arith.constant 9.99999997E-7 : f32
    %213 = vector.broadcast %cst_121 : f32 to vector<10x1xf32>
    %214 = arith.addf %210, %213 : vector<10x1xf32>
    %215 = math.rsqrt %214 : vector<10x1xf32>
    %216 = vector.broadcast %215 : vector<10x1xf32> to vector<10x32xf32>
    %217 = arith.mulf %212, %216 : vector<10x32xf32>
    %218 = vector.broadcast %197 : vector<1x32xf32> to vector<10x32xf32>
    %219 = arith.mulf %217, %218 : vector<10x32xf32>
    %220 = vector.broadcast %199 : vector<1x32xf32> to vector<10x32xf32>
    %221 = arith.addf %219, %220 : vector<10x32xf32>
    %c1_122 = arith.constant 1 : index
    %c0_123 = arith.constant 0 : index
    %c0_124 = arith.constant 0 : index
    %222 = vector.load %arg8[%c1_122, %c0_123, %c0_124] : memref<2x32x96xbf16, #tpu.memory_space<vmem>>, vector<1x32x96xbf16>
    %223 = vector.shape_cast %222 : vector<1x32x96xbf16> to vector<32x96xbf16>
    %224 = arith.truncf %221 : vector<10x32xf32> to vector<10x32xbf16>
    %cst_125 = arith.constant dense<0.000000e+00> : vector<10x96xf32>
    %225 = tpu.matmul %224, %223, %cst_125 {dimension_numbers = #tpu.dot_dimension_numbers<[1], [0], [0], [1], [0, 0, 1, 1], [], []>} : vector<10x32xbf16>, vector<32x96xbf16>, vector<10x96xf32> -> vector<10x96xf32>
    %c1_126 = arith.constant 1 : index
    %c0_127 = arith.constant 0 : index
    %c0_128 = arith.constant 0 : index
    %226 = vector.load %arg9[%c1_126, %c0_127, %c0_128] : memref<2x1x96xf32, #tpu.memory_space<vmem>>, vector<1x1x96xf32>
    %227 = vector.shape_cast %226 : vector<1x1x96xf32> to vector<1x96xf32>
    %228 = vector.broadcast %227 : vector<1x96xf32> to vector<10x96xf32>
    %229 = arith.addf %225, %228 : vector<10x96xf32>
    %c0_129 = arith.constant 0 : index
    %c0_130 = arith.constant 0 : index
    %230 = vector.load %arg26[%c0_129, %c0_130] : memref<10x96xf32, #tpu.memory_space<vmem>>, vector<10x96xf32>
    tpu.vector_store %arg26[%c0_129, %c0_130], %229 {strides = array<i32>} : memref<10x96xf32, #tpu.memory_space<vmem>>, vector<10x96xf32>,
    %c0_131 = arith.constant 0 : index
    %c0_132 = arith.constant 0 : index
    %231 = vector.load %arg26[%c0_131, %c0_132] : memref<10x96xf32, #tpu.memory_space<vmem>>, vector<5x16xf32>
    %cst_133 = arith.constant 2.500000e-01 : f32
    %232 = vector.broadcast %cst_133 : f32 to vector<5x16xf32>
    %233 = arith.mulf %231, %232 : vector<5x16xf32>
    %c0_134 = arith.constant 0 : index
    %c32_135 = arith.constant 32 : index
    %234 = vector.load %arg26[%c0_134, %c32_135] : memref<10x96xf32, #tpu.memory_space<vmem>>, vector<5x16xf32>
    %c0_136 = arith.constant 0 : index
    %c64_137 = arith.constant 64 : index
    %235 = vector.load %arg26[%c0_136, %c64_137] : memref<10x96xf32, #tpu.memory_space<vmem>>, vector<5x16xf32>
    %236 = arith.truncf %233 : vector<5x16xf32> to vector<5x16xbf16>
    %237 = arith.truncf %234 : vector<5x16xf32> to vector<5x16xbf16>
    %cst_138 = arith.constant dense<0.000000e+00> : vector<5x5xf32>
    %238 = tpu.matmul %236, %237, %cst_138 {dimension_numbers = #tpu.dot_dimension_numbers<[1], [1], [0], [0], [0, 0, 1, 0], [], []>} : vector<5x16xbf16>, vector<5x16xbf16>, vector<5x5xf32> -> vector<5x5xf32>
    %cst_139 = arith.constant dense<0xFF800000> : vector<5xf32>
    %239 = vector.multi_reduction <maximumf>, %238, %cst_139 [1] : vector<5x5xf32> to vector<5xf32>
    %240 = vector.shape_cast %239 : vector<5xf32> to vector<5x1xf32>
    %241 = vector.broadcast %240 : vector<5x1xf32> to vector<5x5xf32>
    %242 = arith.subf %238, %241 : vector<5x5xf32>
    %243 = math.exp %242 : vector<5x5xf32>
    %cst_140 = arith.constant dense<0.000000e+00> : vector<5xf32>
    %244 = vector.multi_reduction <add>, %243, %cst_140 [1] : vector<5x5xf32> to vector<5xf32>
    %245 = vector.shape_cast %244 : vector<5xf32> to vector<5x1xf32>
    %246 = tpu.reciprocal %245 {approx = true} : vector<5x1xf32> -> vector<5x1xf32>
    %247 = vector.broadcast %246 : vector<5x1xf32> to vector<5x5xf32>
    %248 = arith.mulf %243, %247 : vector<5x5xf32>
    %249 = arith.truncf %248 : vector<5x5xf32> to vector<5x5xbf16>
    %250 = arith.truncf %235 : vector<5x16xf32> to vector<5x16xbf16>
    %cst_141 = arith.constant dense<0.000000e+00> : vector<5x16xf32>
    %251 = tpu.matmul %249, %250, %cst_141 {dimension_numbers = #tpu.dot_dimension_numbers<[1], [0], [0], [1], [0, 0, 1, 1], [], []>} : vector<5x5xbf16>, vector<5x16xbf16>, vector<5x16xf32> -> vector<5x16xf32>
    %c0_142 = arith.constant 0 : index
    %c0_143 = arith.constant 0 : index
    %252 = vector.load %arg27[%c0_142, %c0_143] : memref<10x32xf32, #tpu.memory_space<vmem>>, vector<5x16xf32>
    tpu.vector_store %arg27[%c0_142, %c0_143], %251 {strides = array<i32>} : memref<10x32xf32, #tpu.memory_space<vmem>>, vector<5x16xf32>,
    %c0_144 = arith.constant 0 : index
    %c16_145 = arith.constant 16 : index
    %253 = vector.load %arg26[%c0_144, %c16_145] : memref<10x96xf32, #tpu.memory_space<vmem>>, vector<5x16xf32>
    %cst_146 = arith.constant 2.500000e-01 : f32
    %254 = vector.broadcast %cst_146 : f32 to vector<5x16xf32>
    %255 = arith.mulf %253, %254 : vector<5x16xf32>
    %c0_147 = arith.constant 0 : index
    %c48_148 = arith.constant 48 : index
    %256 = vector.load %arg26[%c0_147, %c48_148] : memref<10x96xf32, #tpu.memory_space<vmem>>, vector<5x16xf32>
    %c0_149 = arith.constant 0 : index
    %c80_150 = arith.constant 80 : index
    %257 = vector.load %arg26[%c0_149, %c80_150] : memref<10x96xf32, #tpu.memory_space<vmem>>, vector<5x16xf32>
    %258 = arith.truncf %255 : vector<5x16xf32> to vector<5x16xbf16>
    %259 = arith.truncf %256 : vector<5x16xf32> to vector<5x16xbf16>
    %cst_151 = arith.constant dense<0.000000e+00> : vector<5x5xf32>
    %260 = tpu.matmul %258, %259, %cst_151 {dimension_numbers = #tpu.dot_dimension_numbers<[1], [1], [0], [0], [0, 0, 1, 0], [], []>} : vector<5x16xbf16>, vector<5x16xbf16>, vector<5x5xf32> -> vector<5x5xf32>
    %cst_152 = arith.constant dense<0xFF800000> : vector<5xf32>
    %261 = vector.multi_reduction <maximumf>, %260, %cst_152 [1] : vector<5x5xf32> to vector<5xf32>
    %262 = vector.shape_cast %261 : vector<5xf32> to vector<5x1xf32>
    %263 = vector.broadcast %262 : vector<5x1xf32> to vector<5x5xf32>
    %264 = arith.subf %260, %263 : vector<5x5xf32>
    %265 = math.exp %264 : vector<5x5xf32>
    %cst_153 = arith.constant dense<0.000000e+00> : vector<5xf32>
    %266 = vector.multi_reduction <add>, %265, %cst_153 [1] : vector<5x5xf32> to vector<5xf32>
    %267 = vector.shape_cast %266 : vector<5xf32> to vector<5x1xf32>
    %268 = tpu.reciprocal %267 {approx = true} : vector<5x1xf32> -> vector<5x1xf32>
    %269 = vector.broadcast %268 : vector<5x1xf32> to vector<5x5xf32>
    %270 = arith.mulf %265, %269 : vector<5x5xf32>
    %271 = arith.truncf %270 : vector<5x5xf32> to vector<5x5xbf16>
    %272 = arith.truncf %257 : vector<5x16xf32> to vector<5x16xbf16>
    %cst_154 = arith.constant dense<0.000000e+00> : vector<5x16xf32>
    %273 = tpu.matmul %271, %272, %cst_154 {dimension_numbers = #tpu.dot_dimension_numbers<[1], [0], [0], [1], [0, 0, 1, 1], [], []>} : vector<5x5xbf16>, vector<5x16xbf16>, vector<5x16xf32> -> vector<5x16xf32>
    %c0_155 = arith.constant 0 : index
    %c16_156 = arith.constant 16 : index
    %274 = vector.load %arg27[%c0_155, %c16_156] : memref<10x32xf32, #tpu.memory_space<vmem>>, vector<5x16xf32>
    tpu.vector_store %arg27[%c0_155, %c16_156], %273 {strides = array<i32>} : memref<10x32xf32, #tpu.memory_space<vmem>>, vector<5x16xf32>,
    %c5_157 = arith.constant 5 : index
    %c0_158 = arith.constant 0 : index
    %275 = vector.load %arg26[%c5_157, %c0_158] : memref<10x96xf32, #tpu.memory_space<vmem>>, vector<5x16xf32>
    %cst_159 = arith.constant 2.500000e-01 : f32
    %276 = vector.broadcast %cst_159 : f32 to vector<5x16xf32>
    %277 = arith.mulf %275, %276 : vector<5x16xf32>
    %c5_160 = arith.constant 5 : index
    %c32_161 = arith.constant 32 : index
    %278 = vector.load %arg26[%c5_160, %c32_161] : memref<10x96xf32, #tpu.memory_space<vmem>>, vector<5x16xf32>
    %c5_162 = arith.constant 5 : index
    %c64_163 = arith.constant 64 : index
    %279 = vector.load %arg26[%c5_162, %c64_163] : memref<10x96xf32, #tpu.memory_space<vmem>>, vector<5x16xf32>
    %280 = arith.truncf %277 : vector<5x16xf32> to vector<5x16xbf16>
    %281 = arith.truncf %278 : vector<5x16xf32> to vector<5x16xbf16>
    %cst_164 = arith.constant dense<0.000000e+00> : vector<5x5xf32>
    %282 = tpu.matmul %280, %281, %cst_164 {dimension_numbers = #tpu.dot_dimension_numbers<[1], [1], [0], [0], [0, 0, 1, 0], [], []>} : vector<5x16xbf16>, vector<5x16xbf16>, vector<5x5xf32> -> vector<5x5xf32>
    %cst_165 = arith.constant dense<0xFF800000> : vector<5xf32>
    %283 = vector.multi_reduction <maximumf>, %282, %cst_165 [1] : vector<5x5xf32> to vector<5xf32>
    %284 = vector.shape_cast %283 : vector<5xf32> to vector<5x1xf32>
    %285 = vector.broadcast %284 : vector<5x1xf32> to vector<5x5xf32>
    %286 = arith.subf %282, %285 : vector<5x5xf32>
    %287 = math.exp %286 : vector<5x5xf32>
    %cst_166 = arith.constant dense<0.000000e+00> : vector<5xf32>
    %288 = vector.multi_reduction <add>, %287, %cst_166 [1] : vector<5x5xf32> to vector<5xf32>
    %289 = vector.shape_cast %288 : vector<5xf32> to vector<5x1xf32>
    %290 = tpu.reciprocal %289 {approx = true} : vector<5x1xf32> -> vector<5x1xf32>
    %291 = vector.broadcast %290 : vector<5x1xf32> to vector<5x5xf32>
    %292 = arith.mulf %287, %291 : vector<5x5xf32>
    %293 = arith.truncf %292 : vector<5x5xf32> to vector<5x5xbf16>
    %294 = arith.truncf %279 : vector<5x16xf32> to vector<5x16xbf16>
    %cst_167 = arith.constant dense<0.000000e+00> : vector<5x16xf32>
    %295 = tpu.matmul %293, %294, %cst_167 {dimension_numbers = #tpu.dot_dimension_numbers<[1], [0], [0], [1], [0, 0, 1, 1], [], []>} : vector<5x5xbf16>, vector<5x16xbf16>, vector<5x16xf32> -> vector<5x16xf32>
    %c5_168 = arith.constant 5 : index
    %c0_169 = arith.constant 0 : index
    %296 = vector.load %arg27[%c5_168, %c0_169] : memref<10x32xf32, #tpu.memory_space<vmem>>, vector<5x16xf32>
    tpu.vector_store %arg27[%c5_168, %c0_169], %295 {strides = array<i32>} : memref<10x32xf32, #tpu.memory_space<vmem>>, vector<5x16xf32>,
    %c5_170 = arith.constant 5 : index
    %c16_171 = arith.constant 16 : index
    %297 = vector.load %arg26[%c5_170, %c16_171] : memref<10x96xf32, #tpu.memory_space<vmem>>, vector<5x16xf32>
    %cst_172 = arith.constant 2.500000e-01 : f32
    %298 = vector.broadcast %cst_172 : f32 to vector<5x16xf32>
    %299 = arith.mulf %297, %298 : vector<5x16xf32>
    %c5_173 = arith.constant 5 : index
    %c48_174 = arith.constant 48 : index
    %300 = vector.load %arg26[%c5_173, %c48_174] : memref<10x96xf32, #tpu.memory_space<vmem>>, vector<5x16xf32>
    %c5_175 = arith.constant 5 : index
    %c80_176 = arith.constant 80 : index
    %301 = vector.load %arg26[%c5_175, %c80_176] : memref<10x96xf32, #tpu.memory_space<vmem>>, vector<5x16xf32>
    %302 = arith.truncf %299 : vector<5x16xf32> to vector<5x16xbf16>
    %303 = arith.truncf %300 : vector<5x16xf32> to vector<5x16xbf16>
    %cst_177 = arith.constant dense<0.000000e+00> : vector<5x5xf32>
    %304 = tpu.matmul %302, %303, %cst_177 {dimension_numbers = #tpu.dot_dimension_numbers<[1], [1], [0], [0], [0, 0, 1, 0], [], []>} : vector<5x16xbf16>, vector<5x16xbf16>, vector<5x5xf32> -> vector<5x5xf32>
    %cst_178 = arith.constant dense<0xFF800000> : vector<5xf32>
    %305 = vector.multi_reduction <maximumf>, %304, %cst_178 [1] : vector<5x5xf32> to vector<5xf32>
    %306 = vector.shape_cast %305 : vector<5xf32> to vector<5x1xf32>
    %307 = vector.broadcast %306 : vector<5x1xf32> to vector<5x5xf32>
    %308 = arith.subf %304, %307 : vector<5x5xf32>
    %309 = math.exp %308 : vector<5x5xf32>
    %cst_179 = arith.constant dense<0.000000e+00> : vector<5xf32>
    %310 = vector.multi_reduction <add>, %309, %cst_179 [1] : vector<5x5xf32> to vector<5xf32>
    %311 = vector.shape_cast %310 : vector<5xf32> to vector<5x1xf32>
    %312 = tpu.reciprocal %311 {approx = true} : vector<5x1xf32> -> vector<5x1xf32>
    %313 = vector.broadcast %312 : vector<5x1xf32> to vector<5x5xf32>
    %314 = arith.mulf %309, %313 : vector<5x5xf32>
    %315 = arith.truncf %314 : vector<5x5xf32> to vector<5x5xbf16>
    %316 = arith.truncf %301 : vector<5x16xf32> to vector<5x16xbf16>
    %cst_180 = arith.constant dense<0.000000e+00> : vector<5x16xf32>
    %317 = tpu.matmul %315, %316, %cst_180 {dimension_numbers = #tpu.dot_dimension_numbers<[1], [0], [0], [1], [0, 0, 1, 1], [], []>} : vector<5x5xbf16>, vector<5x16xbf16>, vector<5x16xf32> -> vector<5x16xf32>
    %c5_181 = arith.constant 5 : index
    %c16_182 = arith.constant 16 : index
    %318 = vector.load %arg27[%c5_181, %c16_182] : memref<10x32xf32, #tpu.memory_space<vmem>>, vector<5x16xf32>
    tpu.vector_store %arg27[%c5_181, %c16_182], %317 {strides = array<i32>} : memref<10x32xf32, #tpu.memory_space<vmem>>, vector<5x16xf32>,
    %c0_183 = arith.constant 0 : index
    %c0_184 = arith.constant 0 : index
    %319 = vector.load %arg27[%c0_183, %c0_184] : memref<10x32xf32, #tpu.memory_space<vmem>>, vector<10x32xf32>
    %c1_185 = arith.constant 1 : index
    %c0_186 = arith.constant 0 : index
    %c0_187 = arith.constant 0 : index
    %320 = vector.load %arg10[%c1_185, %c0_186, %c0_187] : memref<2x32x32xbf16, #tpu.memory_space<vmem>>, vector<1x32x32xbf16>
    %321 = vector.shape_cast %320 : vector<1x32x32xbf16> to vector<32x32xbf16>
    %322 = arith.truncf %319 : vector<10x32xf32> to vector<10x32xbf16>
    %cst_188 = arith.constant dense<0.000000e+00> : vector<10x32xf32>
    %323 = tpu.matmul %322, %321, %cst_188 {dimension_numbers = #tpu.dot_dimension_numbers<[1], [0], [0], [1], [0, 0, 1, 1], [], []>} : vector<10x32xbf16>, vector<32x32xbf16>, vector<10x32xf32> -> vector<10x32xf32>
    %324 = arith.addf %195, %323 : vector<10x32xf32>
    %c1_189 = arith.constant 1 : index
    %c0_190 = arith.constant 0 : index
    %c0_191 = arith.constant 0 : index
    %325 = vector.load %arg11[%c1_189, %c0_190, %c0_191] : memref<2x1x32xf32, #tpu.memory_space<vmem>>, vector<1x1x32xf32>
    %326 = vector.shape_cast %325 : vector<1x1x32xf32> to vector<1x32xf32>
    %327 = vector.broadcast %326 : vector<1x32xf32> to vector<10x32xf32>
    %328 = arith.addf %324, %327 : vector<10x32xf32>
    %c1_192 = arith.constant 1 : index
    %c0_193 = arith.constant 0 : index
    %c0_194 = arith.constant 0 : index
    %329 = vector.load %arg12[%c1_192, %c0_193, %c0_194] : memref<2x1x32xf32, #tpu.memory_space<vmem>>, vector<1x1x32xf32>
    %330 = vector.shape_cast %329 : vector<1x1x32xf32> to vector<1x32xf32>
    %c1_195 = arith.constant 1 : index
    %c0_196 = arith.constant 0 : index
    %c0_197 = arith.constant 0 : index
    %331 = vector.load %arg13[%c1_195, %c0_196, %c0_197] : memref<2x1x32xf32, #tpu.memory_space<vmem>>, vector<1x1x32xf32>
    %332 = vector.shape_cast %331 : vector<1x1x32xf32> to vector<1x32xf32>
    %cst_198 = arith.constant dense<0.000000e+00> : vector<10xf32>
    %333 = vector.multi_reduction <add>, %328, %cst_198 [1] : vector<10x32xf32> to vector<10xf32>
    %334 = vector.shape_cast %333 : vector<10xf32> to vector<10x1xf32>
    %cst_199 = arith.constant 3.200000e+01 : f32
    %335 = vector.broadcast %cst_199 : f32 to vector<10x1xf32>
    %336 = arith.divf %334, %335 : vector<10x1xf32>
    %337 = vector.broadcast %336 : vector<10x1xf32> to vector<10x32xf32>
    %338 = arith.subf %328, %337 : vector<10x32xf32>
    %339 = arith.mulf %338, %338 : vector<10x32xf32>
    %cst_200 = arith.constant dense<0.000000e+00> : vector<10xf32>
    %340 = vector.multi_reduction <add>, %339, %cst_200 [1] : vector<10x32xf32> to vector<10xf32>
    %341 = vector.shape_cast %340 : vector<10xf32> to vector<10x1xf32>
    %cst_201 = arith.constant 3.200000e+01 : f32
    %342 = vector.broadcast %cst_201 : f32 to vector<10x1xf32>
    %343 = arith.divf %341, %342 : vector<10x1xf32>
    %344 = vector.broadcast %336 : vector<10x1xf32> to vector<10x32xf32>
    %345 = arith.subf %328, %344 : vector<10x32xf32>
    %cst_202 = arith.constant 9.99999997E-7 : f32
    %346 = vector.broadcast %cst_202 : f32 to vector<10x1xf32>
    %347 = arith.addf %343, %346 : vector<10x1xf32>
    %348 = math.rsqrt %347 : vector<10x1xf32>
    %349 = vector.broadcast %348 : vector<10x1xf32> to vector<10x32xf32>
    %350 = arith.mulf %345, %349 : vector<10x32xf32>
    %351 = vector.broadcast %330 : vector<1x32xf32> to vector<10x32xf32>
    %352 = arith.mulf %350, %351 : vector<10x32xf32>
    %353 = vector.broadcast %332 : vector<1x32xf32> to vector<10x32xf32>
    %354 = arith.addf %352, %353 : vector<10x32xf32>
    %c1_203 = arith.constant 1 : index
    %c0_204 = arith.constant 0 : index
    %c0_205 = arith.constant 0 : index
    %355 = vector.load %arg14[%c1_203, %c0_204, %c0_205] : memref<2x32x128xbf16, #tpu.memory_space<vmem>>, vector<1x32x128xbf16>
    %356 = vector.shape_cast %355 : vector<1x32x128xbf16> to vector<32x128xbf16>
    %357 = arith.truncf %354 : vector<10x32xf32> to vector<10x32xbf16>
    %cst_206 = arith.constant dense<0.000000e+00> : vector<10x128xf32>
    %358 = tpu.matmul %357, %356, %cst_206 {dimension_numbers = #tpu.dot_dimension_numbers<[1], [0], [0], [1], [0, 0, 1, 1], [], []>} : vector<10x32xbf16>, vector<32x128xbf16>, vector<10x128xf32> -> vector<10x128xf32>
    %c1_207 = arith.constant 1 : index
    %c0_208 = arith.constant 0 : index
    %c0_209 = arith.constant 0 : index
    %359 = vector.load %arg15[%c1_207, %c0_208, %c0_209] : memref<2x1x128xf32, #tpu.memory_space<vmem>>, vector<1x1x128xf32>
    %360 = vector.shape_cast %359 : vector<1x1x128xf32> to vector<1x128xf32>
    %361 = vector.broadcast %360 : vector<1x128xf32> to vector<10x128xf32>
    %362 = arith.addf %358, %361 : vector<10x128xf32>
    %cst_210 = arith.constant 5.000000e-01 : f32
    %363 = vector.broadcast %cst_210 : f32 to vector<10x128xf32>
    %364 = arith.mulf %363, %362 : vector<10x128xf32>
    %cst_211 = arith.constant 0.707106769 : f32
    %365 = vector.broadcast %cst_211 : f32 to vector<10x128xf32>
    %366 = arith.mulf %362, %365 : vector<10x128xf32>
    %367 = math.erf %366 : vector<10x128xf32>
    %cst_212 = arith.constant 1.000000e+00 : f32
    %368 = vector.broadcast %cst_212 : f32 to vector<10x128xf32>
    %369 = arith.addf %368, %367 : vector<10x128xf32>
    %370 = arith.mulf %364, %369 : vector<10x128xf32>
    %c1_213 = arith.constant 1 : index
    %c0_214 = arith.constant 0 : index
    %c0_215 = arith.constant 0 : index
    %371 = vector.load %arg16[%c1_213, %c0_214, %c0_215] : memref<2x128x32xbf16, #tpu.memory_space<vmem>>, vector<1x128x32xbf16>
    %372 = vector.shape_cast %371 : vector<1x128x32xbf16> to vector<128x32xbf16>
    %373 = arith.truncf %370 : vector<10x128xf32> to vector<10x128xbf16>
    %cst_216 = arith.constant dense<0.000000e+00> : vector<10x32xf32>
    %374 = tpu.matmul %373, %372, %cst_216 {dimension_numbers = #tpu.dot_dimension_numbers<[1], [0], [0], [1], [0, 0, 1, 1], [], []>} : vector<10x128xbf16>, vector<128x32xbf16>, vector<10x32xf32> -> vector<10x32xf32>
    %375 = arith.addf %328, %374 : vector<10x32xf32>
    %c1_217 = arith.constant 1 : index
    %c0_218 = arith.constant 0 : index
    %c0_219 = arith.constant 0 : index
    %376 = vector.load %arg17[%c1_217, %c0_218, %c0_219] : memref<2x1x32xf32, #tpu.memory_space<vmem>>, vector<1x1x32xf32>
    %377 = vector.shape_cast %376 : vector<1x1x32xf32> to vector<1x32xf32>
    %378 = vector.broadcast %377 : vector<1x32xf32> to vector<10x32xf32>
    %379 = arith.addf %375, %378 : vector<10x32xf32>
    %c0_220 = arith.constant 0 : index
    %c0_221 = arith.constant 0 : index
    %380 = vector.load %arg18[%c0_220, %c0_221] : memref<1x32xf32, #tpu.memory_space<vmem>>, vector<1x32xf32>
    %c0_222 = arith.constant 0 : index
    %c0_223 = arith.constant 0 : index
    %381 = vector.load %arg19[%c0_222, %c0_223] : memref<1x32xf32, #tpu.memory_space<vmem>>, vector<1x32xf32>
    %cst_224 = arith.constant dense<0.000000e+00> : vector<10xf32>
    %382 = vector.multi_reduction <add>, %379, %cst_224 [1] : vector<10x32xf32> to vector<10xf32>
    %383 = vector.shape_cast %382 : vector<10xf32> to vector<10x1xf32>
    %cst_225 = arith.constant 3.200000e+01 : f32
    %384 = vector.broadcast %cst_225 : f32 to vector<10x1xf32>
    %385 = arith.divf %383, %384 : vector<10x1xf32>
    %386 = vector.broadcast %385 : vector<10x1xf32> to vector<10x32xf32>
    %387 = arith.subf %379, %386 : vector<10x32xf32>
    %388 = arith.mulf %387, %387 : vector<10x32xf32>
    %cst_226 = arith.constant dense<0.000000e+00> : vector<10xf32>
    %389 = vector.multi_reduction <add>, %388, %cst_226 [1] : vector<10x32xf32> to vector<10xf32>
    %390 = vector.shape_cast %389 : vector<10xf32> to vector<10x1xf32>
    %cst_227 = arith.constant 3.200000e+01 : f32
    %391 = vector.broadcast %cst_227 : f32 to vector<10x1xf32>
    %392 = arith.divf %390, %391 : vector<10x1xf32>
    %393 = vector.broadcast %385 : vector<10x1xf32> to vector<10x32xf32>
    %394 = arith.subf %379, %393 : vector<10x32xf32>
    %cst_228 = arith.constant 9.99999997E-7 : f32
    %395 = vector.broadcast %cst_228 : f32 to vector<10x1xf32>
    %396 = arith.addf %392, %395 : vector<10x1xf32>
    %397 = math.rsqrt %396 : vector<10x1xf32>
    %398 = vector.broadcast %397 : vector<10x1xf32> to vector<10x32xf32>
    %399 = arith.mulf %394, %398 : vector<10x32xf32>
    %400 = vector.broadcast %380 : vector<1x32xf32> to vector<10x32xf32>
    %401 = arith.mulf %399, %400 : vector<10x32xf32>
    %402 = vector.broadcast %381 : vector<1x32xf32> to vector<10x32xf32>
    %403 = arith.addf %401, %402 : vector<10x32xf32>
    %c0_229 = arith.constant 0 : index
    %c0_230 = arith.constant 0 : index
    %404 = vector.load %arg25[%c0_229, %c0_230] : memref<10x32xf32, #tpu.memory_space<vmem>>, vector<10x32xf32>
    tpu.vector_store %arg25[%c0_229, %c0_230], %403 {strides = array<i32>} : memref<10x32xf32, #tpu.memory_space<vmem>>, vector<10x32xf32>,
    %c0_231 = arith.constant 0 : index
    %c0_232 = arith.constant 0 : index
    %405 = vector.load %arg25[%c0_231, %c0_232] : memref<10x32xf32, #tpu.memory_space<vmem>>, vector<1x32xf32>
    %c0_233 = arith.constant 0 : index
    %c0_234 = arith.constant 0 : index
    %406 = vector.load %arg28[%c0_233, %c0_234] : memref<2x32xf32, #tpu.memory_space<vmem>>, vector<1x32xf32>
    tpu.vector_store %arg28[%c0_233, %c0_234], %405 {strides = array<i32>} : memref<2x32xf32, #tpu.memory_space<vmem>>, vector<1x32xf32>,
    %c5_235 = arith.constant 5 : index
    %c0_236 = arith.constant 0 : index
    %407 = vector.load %arg25[%c5_235, %c0_236] : memref<10x32xf32, #tpu.memory_space<vmem>>, vector<1x32xf32>
    %c1_237 = arith.constant 1 : index
    %c0_238 = arith.constant 0 : index
    %408 = vector.load %arg28[%c1_237, %c0_238] : memref<2x32xf32, #tpu.memory_space<vmem>>, vector<1x32xf32>
    tpu.vector_store %arg28[%c1_237, %c0_238], %407 {strides = array<i32>} : memref<2x32xf32, #tpu.memory_space<vmem>>, vector<1x32xf32>,
    %c0_239 = arith.constant 0 : index
    %c0_240 = arith.constant 0 : index
    %409 = vector.load %arg28[%c0_239, %c0_240] : memref<2x32xf32, #tpu.memory_space<vmem>>, vector<2x32xf32>
    %c0_241 = arith.constant 0 : index
    %c0_242 = arith.constant 0 : index
    %410 = vector.load %arg20[%c0_241, %c0_242] : memref<32x10xbf16, #tpu.memory_space<vmem>>, vector<32x10xbf16>
    %411 = arith.truncf %409 : vector<2x32xf32> to vector<2x32xbf16>
    %cst_243 = arith.constant dense<0.000000e+00> : vector<2x10xf32>
    %412 = tpu.matmul %411, %410, %cst_243 {dimension_numbers = #tpu.dot_dimension_numbers<[1], [0], [0], [1], [0, 0, 1, 1], [], []>} : vector<2x32xbf16>, vector<32x10xbf16>, vector<2x10xf32> -> vector<2x10xf32>
    %c0_244 = arith.constant 0 : index
    %c0_245 = arith.constant 0 : index
    %413 = vector.load %arg21[%c0_244, %c0_245] : memref<1x10xf32, #tpu.memory_space<vmem>>, vector<1x10xf32>
    %414 = vector.broadcast %413 : vector<1x10xf32> to vector<2x10xf32>
    %415 = arith.addf %412, %414 : vector<2x10xf32>
    %cst_246 = arith.constant 5.000000e-01 : f32
    %416 = vector.broadcast %cst_246 : f32 to vector<2x10xf32>
    %417 = arith.mulf %416, %415 : vector<2x10xf32>
    %cst_247 = arith.constant 0.707106769 : f32
    %418 = vector.broadcast %cst_247 : f32 to vector<2x10xf32>
    %419 = arith.mulf %415, %418 : vector<2x10xf32>
    %420 = math.erf %419 : vector<2x10xf32>
    %cst_248 = arith.constant 1.000000e+00 : f32
    %421 = vector.broadcast %cst_248 : f32 to vector<2x10xf32>
    %422 = arith.addf %421, %420 : vector<2x10xf32>
    %423 = arith.mulf %417, %422 : vector<2x10xf32>
    %c0_249 = arith.constant 0 : index
    %c0_250 = arith.constant 0 : index
    %424 = vector.load %arg22[%c0_249, %c0_250] : memref<10x1xbf16, #tpu.memory_space<vmem>>, vector<10x1xbf16>
    %425 = arith.truncf %423 : vector<2x10xf32> to vector<2x10xbf16>
    %cst_251 = arith.constant dense<0.000000e+00> : vector<2x1xf32>
    %426 = tpu.matmul %425, %424, %cst_251 {dimension_numbers = #tpu.dot_dimension_numbers<[1], [0], [0], [1], [0, 0, 1, 1], [], []>} : vector<2x10xbf16>, vector<10x1xbf16>, vector<2x1xf32> -> vector<2x1xf32>
    %c0_252 = arith.constant 0 : index
    %c0_253 = arith.constant 0 : index
    %427 = vector.load %arg23[%c0_252, %c0_253] : memref<1x1xf32, #tpu.memory_space<vmem>>, vector<1x1xf32>
    %428 = vector.broadcast %427 : vector<1x1xf32> to vector<2x1xf32>
    %429 = arith.addf %426, %428 : vector<2x1xf32>
    %c0_254 = arith.constant 0 : index
    %c0_255 = arith.constant 0 : index
    %430 = vector.load %arg24[%c0_254, %c0_255] : memref<2x1xf32, #tpu.memory_space<vmem>>, vector<2x1xf32>
    tpu.vector_store %arg24[%c0_254, %c0_255], %429 {strides = array<i32>} : memref<2x1xf32, #tpu.memory_space<vmem>>, vector<2x1xf32>,
    return
  }
  func.func @transform_0(%arg0: i32) -> (i32, i32) {
    %c0_i32 = arith.constant 0 : i32
    %c0_i32_0 = arith.constant 0 : i32
    %c0_i32_1 = arith.constant 0 : i32
    return %c0_i32, %c0_i32_0 : i32, i32
  }
  func.func @transform_1(%arg0: i32) -> (i32, i32) {
    %c0_i32 = arith.constant 0 : i32
    %c0_i32_0 = arith.constant 0 : i32
    %c0_i32_1 = arith.constant 0 : i32
    return %c0_i32, %c0_i32_0 : i32, i32
  }
  func.func @transform_2(%arg0: i32) -> (i32, i32) {
    %c0_i32 = arith.constant 0 : i32
    %c0_i32_0 = arith.constant 0 : i32
    %c0_i32_1 = arith.constant 0 : i32
    return %c0_i32, %c0_i32_0 : i32, i32
  }
  func.func @transform_3(%arg0: i32) -> (i32, i32) {
    %c0_i32 = arith.constant 0 : i32
    %c0_i32_0 = arith.constant 0 : i32
    %c0_i32_1 = arith.constant 0 : i32
    return %c0_i32, %c0_i32_0 : i32, i32
  }
  func.func @transform_4(%arg0: i32) -> (i32, i32) {
    %c0_i32 = arith.constant 0 : i32
    %c0_i32_0 = arith.constant 0 : i32
    %c0_i32_1 = arith.constant 0 : i32
    return %c0_i32, %c0_i32_0 : i32, i32
  }
  func.func @transform_5(%arg0: i32) -> (i32, i32, i32) {
    %c0_i32 = arith.constant 0 : i32
    %c0_i32_0 = arith.constant 0 : i32
    %c0_i32_1 = arith.constant 0 : i32
    %c0_i32_2 = arith.constant 0 : i32
    return %c0_i32, %c0_i32_0, %c0_i32_1 : i32, i32, i32
  }
  func.func @transform_6(%arg0: i32) -> (i32, i32, i32) {
    %c0_i32 = arith.constant 0 : i32
    %c0_i32_0 = arith.constant 0 : i32
    %c0_i32_1 = arith.constant 0 : i32
    %c0_i32_2 = arith.constant 0 : i32
    return %c0_i32, %c0_i32_0, %c0_i32_1 : i32, i32, i32
  }
  func.func @transform_7(%arg0: i32) -> (i32, i32, i32) {
    %c0_i32 = arith.constant 0 : i32
    %c0_i32_0 = arith.constant 0 : i32
    %c0_i32_1 = arith.constant 0 : i32
    %c0_i32_2 = arith.constant 0 : i32
    return %c0_i32, %c0_i32_0, %c0_i32_1 : i32, i32, i32
  }
  func.func @transform_8(%arg0: i32) -> (i32, i32, i32) {
    %c0_i32 = arith.constant 0 : i32
    %c0_i32_0 = arith.constant 0 : i32
    %c0_i32_1 = arith.constant 0 : i32
    %c0_i32_2 = arith.constant 0 : i32
    return %c0_i32, %c0_i32_0, %c0_i32_1 : i32, i32, i32
  }
  func.func @transform_9(%arg0: i32) -> (i32, i32, i32) {
    %c0_i32 = arith.constant 0 : i32
    %c0_i32_0 = arith.constant 0 : i32
    %c0_i32_1 = arith.constant 0 : i32
    %c0_i32_2 = arith.constant 0 : i32
    return %c0_i32, %c0_i32_0, %c0_i32_1 : i32, i32, i32
  }
  func.func @transform_10(%arg0: i32) -> (i32, i32, i32) {
    %c0_i32 = arith.constant 0 : i32
    %c0_i32_0 = arith.constant 0 : i32
    %c0_i32_1 = arith.constant 0 : i32
    %c0_i32_2 = arith.constant 0 : i32
    return %c0_i32, %c0_i32_0, %c0_i32_1 : i32, i32, i32
  }
  func.func @transform_11(%arg0: i32) -> (i32, i32, i32) {
    %c0_i32 = arith.constant 0 : i32
    %c0_i32_0 = arith.constant 0 : i32
    %c0_i32_1 = arith.constant 0 : i32
    %c0_i32_2 = arith.constant 0 : i32
    return %c0_i32, %c0_i32_0, %c0_i32_1 : i32, i32, i32
  }
  func.func @transform_12(%arg0: i32) -> (i32, i32, i32) {
    %c0_i32 = arith.constant 0 : i32
    %c0_i32_0 = arith.constant 0 : i32
    %c0_i32_1 = arith.constant 0 : i32
    %c0_i32_2 = arith.constant 0 : i32
    return %c0_i32, %c0_i32_0, %c0_i32_1 : i32, i32, i32
  }
  func.func @transform_13(%arg0: i32) -> (i32, i32, i32) {
    %c0_i32 = arith.constant 0 : i32
    %c0_i32_0 = arith.constant 0 : i32
    %c0_i32_1 = arith.constant 0 : i32
    %c0_i32_2 = arith.constant 0 : i32
    return %c0_i32, %c0_i32_0, %c0_i32_1 : i32, i32, i32
  }
  func.func @transform_14(%arg0: i32) -> (i32, i32, i32) {
    %c0_i32 = arith.constant 0 : i32
    %c0_i32_0 = arith.constant 0 : i32
    %c0_i32_1 = arith.constant 0 : i32
    %c0_i32_2 = arith.constant 0 : i32
    return %c0_i32, %c0_i32_0, %c0_i32_1 : i32, i32, i32
  }
  func.func @transform_15(%arg0: i32) -> (i32, i32, i32) {
    %c0_i32 = arith.constant 0 : i32
    %c0_i32_0 = arith.constant 0 : i32
    %c0_i32_1 = arith.constant 0 : i32
    %c0_i32_2 = arith.constant 0 : i32
    return %c0_i32, %c0_i32_0, %c0_i32_1 : i32, i32, i32
  }
  func.func @transform_16(%arg0: i32) -> (i32, i32, i32) {
    %c0_i32 = arith.constant 0 : i32
    %c0_i32_0 = arith.constant 0 : i32
    %c0_i32_1 = arith.constant 0 : i32
    %c0_i32_2 = arith.constant 0 : i32
    return %c0_i32, %c0_i32_0, %c0_i32_1 : i32, i32, i32
  }
  func.func @transform_17(%arg0: i32) -> (i32, i32) {
    %c0_i32 = arith.constant 0 : i32
    %c0_i32_0 = arith.constant 0 : i32
    %c0_i32_1 = arith.constant 0 : i32
    return %c0_i32, %c0_i32_0 : i32, i32
  }
  func.func @transform_18(%arg0: i32) -> (i32, i32) {
    %c0_i32 = arith.constant 0 : i32
    %c0_i32_0 = arith.constant 0 : i32
    %c0_i32_1 = arith.constant 0 : i32
    return %c0_i32, %c0_i32_0 : i32, i32
  }
  func.func @transform_19(%arg0: i32) -> (i32, i32) {
    %c0_i32 = arith.constant 0 : i32
    %c0_i32_0 = arith.constant 0 : i32
    %c0_i32_1 = arith.constant 0 : i32
    return %c0_i32, %c0_i32_0 : i32, i32
  }
  func.func @transform_20(%arg0: i32) -> (i32, i32) {
    %c0_i32 = arith.constant 0 : i32
    %c0_i32_0 = arith.constant 0 : i32
    %c0_i32_1 = arith.constant 0 : i32
    return %c0_i32, %c0_i32_0 : i32, i32
  }
  func.func @transform_21(%arg0: i32) -> (i32, i32) {
    %c0_i32 = arith.constant 0 : i32
    %c0_i32_0 = arith.constant 0 : i32
    %c0_i32_1 = arith.constant 0 : i32
    return %c0_i32, %c0_i32_0 : i32, i32
  }
  func.func @transform_22(%arg0: i32) -> (i32, i32) {
    %c0_i32 = arith.constant 0 : i32
    %c0_i32_0 = arith.constant 0 : i32
    %c0_i32_1 = arith.constant 0 : i32
    return %c0_i32, %c0_i32_0 : i32, i32
  }
  func.func @transform_23(%arg0: i32) -> (i32, i32) {
    %c0_i32 = arith.constant 0 : i32
    %c0_i32_0 = arith.constant 0 : i32
    %c0_i32_1 = arith.constant 0 : i32
    return %c0_i32, %c0_i32_0 : i32, i32
  }
}

</mosaic_0001>

<bundles_post_ra>
// kernel: tile.9
= control target key start
LH: loop header
LB: loop body
LE: loop exit
PB: predicated region body
PF: predicated region fallthrough
CT: control target
= control target key end

     0   :  { %vm3_vm0 = vcmask 261120   ;;  %s34_s0 = inlined_call_operand.vmem [shape: f32[2,5,32], index: 0, kind: input, shape index: {}]   ;;  %s35_s1 = inlined_call_operand.vmem [shape: f32[10,32], index: 1, kind: output, shape index: {}]  }
   0x1   :  { %v2_v0 = vld [vmem:[%s34_s0] sm:$0x1f]   ;;  %v10_v1 = vld [vmem:[%s34_s0 + $0x8] sm:$0x1f]  }
   0x2   :  { %4 = vst.msk [vmem:[%s35_s1] sm:$0x1f] %vm3_vm0, %v2_v0   ;;  %11 = vst.msk [vmem:[%s35_s1 + $0x5] sm:$0x1f] %vm3_vm0, %v10_v1  }

// kernel: vit_forward.1
= control target key start
LH: loop header
LB: loop body
LE: loop exit
PB: predicated region body
PF: predicated region fallthrough
CT: control target
= control target key end

     0   :  { %v2774_v0 = vmov 0   ;;  %vm186_vm0 = vcmask 523264   ;;  %vm251_vm1 = vcmask 261120   ;;  %vm255_vm2 = vcmask 254976   ;;  %s2781_s26 = smov 80   ;;  %s3422_s27 = smov 16   ;;  %s3391_s3 = inlined_call_operand.vmem [shape: bf16[192,32], index: 3, kind: input, shape index: {}]   ;;  %s3392_s0 = inlined_call_operand.vmem [shape: f32[10,192], index: 0, kind: input, shape index: {}]   ;;  %s3393_s1 = inlined_call_operand.vmem [shape: f32[10,1], index: 1, kind: input, shape index: {}]   ;;  %s3394_s4 = inlined_call_operand.vmem [shape: f32[1,32], index: 4, kind: input, shape index: {}]   ;;  %s3395_s2 = inlined_call_operand.vmem [shape: f32[10,32], index: 2, kind: input, shape index: {}]   ;;  %s3396_s7 = inlined_call_operand.vmem [shape: bf16[2,32,96], index: 7, kind: input, shape index: {}]   ;;  %s3397_s5 = inlined_call_operand.vmem [shape: f32[2,1,32], index: 5, kind: input, shape index: {}]   ;;  %s3398_s6 = inlined_call_operand.vmem [shape: f32[2,1,32], index: 6, kind: input, shape index: {}]   ;;  %s3399_s8 = inlined_call_operand.vmem [shape: f32[2,1,96], index: 8, kind: input, shape index: {}]   ;;  %s3400_s9 = inlined_call_operand.vmem [shape: bf16[2,32,32], index: 9, kind: input, shape index: {}]   ;;  %s3401_s10 = inlined_call_operand.vmem [shape: f32[2,1,32], index: 10, kind: input, shape index: {}]   ;;  %s3402_s13 = inlined_call_operand.vmem [shape: bf16[2,32,128], index: 13, kind: input, shape index: {}]   ;;  %s3403_s15 = inlined_call_operand.vmem [shape: bf16[2,128,32], index: 15, kind: input, shape index: {}]   ;;  %s3404_s11 = inlined_call_operand.vmem [shape: f32[2,1,32], index: 11, kind: input, shape index: {}]   ;;  %s3405_s12 = inlined_call_operand.vmem [shape: f32[2,1,32], index: 12, kind: input, shape index: {}]   ;;  %s3406_s14 = inlined_call_operand.vmem [shape: f32[2,1,128], index: 14, kind: input, shape index: {}]   ;;  %s3407_s16 = inlined_call_operand.vmem [shape: f32[2,1,32], index: 16, kind: input, shape index: {}]   ;;  %s3408_s19 = inlined_call_operand.vmem [shape: bf16[32,10], index: 19, kind: input, shape index: {}]   ;;  %s3409_s17 = inlined_call_operand.vmem [shape: f32[1,32], index: 17, kind: input, shape index: {}]   ;;  %s3410_s18 = inlined_call_operand.vmem [shape: f32[1,32], index: 18, kind: input, shape index: {}]   ;;  %s3411_s21 = inlined_call_operand.vmem [shape: bf16[10,1], index: 21, kind: input, shape index: {}]   ;;  %s3412_s22 = inlined_call_operand.<no memory space> [shape: f32[1,1], index: 22, kind: input, shape index: {}]   ;;  %s3413_s20 = inlined_call_operand.vmem [shape: f32[1,10], index: 20, kind: input, shape index: {}]   ;;  %s3414_s23 = inlined_call_operand.vmem [shape: f32[2,1], index: 23, kind: output, shape index: {}]  }
   0x1   :  { %3424 = sst [smem:[#allocation7_spill]] %s3391_s3  ;;  %190 = vmatprep.subr.bf16.mxu0 %v2774_v0  ;;  %2668 = vset.pattern.permute.xlu0 %v2774_v0  ;;  %v2775_v48 = vmov 0.0   ;;  %vm2776_vm3 = vmmov 0   ;;  %vm364_vm4 = vcmask 785408   ;;  %vm366_vm5 = vcmask 779264  }
   0x2   :  { %3425 = sst [smem:[#allocation8_spill]] %s3392_s0  ;;  %2460 = vmatprep.subr.bf16.mxu1 %v2775_v48  ;;  %2464 = vmatprep.mubr.msk.bf16.mxu1 %vm2776_vm3, %v2775_v48  ;;  %vm375_vm6 = vcmask 130048   ;;  %vm441_vm7 = vcmask 1041408   ;;  %vm442_vm8 = vcmask 1042432   ;;  %vm422_vm9 = vcmask 36864   ;;  %s2780_s0 = smov 112  }
   0x3   :  { %3426 = sst [smem:[#allocation9_spill]] %s3393_s1  ;;  %vm437_vm10 = vcmask 39936   ;;  %vm488_vm11 = vcmask 126976   ;;  %vm610_vm12 = vcmask 258176   ;;  %vm2116_vm13 = vcmask 253952  }
   0x4   :  { %3427 = sst [smem:[#allocation10_spill]] %s3394_s4  ;;  %vm2212_vm14 = vcmask 1044480   ;;  %vm2208_vm15 = vcmask 80896  }
   0x5   :  { %3428 = sst [smem:[#allocation11_spill]] %s3395_s2 }
   0x6   :  { %3429 = sst [smem:[#allocation12_spill]] %s3396_s7  ;;  %s2778_s7 = smov 96  }
   0x7   :  { %3430 = sst [smem:[#allocation13_spill]] %s3397_s5  ;;  %s2782_s5 = smov 48  }
   0x8   :  { %3431 = sst [smem:[#allocation14_spill]] %s3398_s6 }
   0x9   :  { %s3432_s24 = sld [smem:[#allocation7_spill]] }
   0xa   :  { %s3433_s28 = sld [smem:[#allocation8_spill]] }
   0xb   :  { %s3434_s30 = sld [smem:[#allocation9_spill]] }
   0xc   :  { %s3435_s2 = sld [smem:[#allocation10_spill]] }
   0xd   :  { %s3436_s25 = sld [smem:[#allocation11_spill]] }
   0xe   :  { %s3437_s1 = sld [smem:[#allocation12_spill]] }
   0xf   :  { %v2669_v1 = vld [vmem:[%s3432_s24 + $0x38] sm:$0xff]   ;;  %v2670_v2 = vld [vmem:[%s3432_s24 + $0x30] sm:$0xff]   ;;  %v2671_v3 = vld [vmem:[%s3432_s24 + $0x28] sm:$0xff]   ;;  %s3438_s4 = sld [smem:[#allocation13_spill]] }
  0x10   :  { %191 = vmatpush1.bf16.msra.mxu0 %v2669_v1  ;;  %v2672_v4 = vld [vmem:[%s3432_s24 + $0x20] sm:$0xff]   ;;  %v78_v5 = vld [vmem:[%s3433_s28 + $0x8] sm:$0xff]  ;;  %v80_v6 = vld [vmem:[%s3433_s28 + $0x18] sm:$0x3] }
  0x11   :  { %192 = vmatprep.subr.bf16.mxu0 %v2774_v0  ;;  %v106_v7 = vpack.c.bf16 %v80_v6, %v78_v5  ;;  %v231_v8 = vld [vmem:[%s3434_s30] sm:$0xff]  ;;  %v2673_v9 = vld [vmem:[%s3432_s24 + $0x18] sm:$0xff]   ;;  %v232_v10 = vld [vmem:[%s3434_s30 + $0x8] sm:$0x3] }
  0x12   :  { %235 = vperm.xlu0 %2668, %v231_v8   ;;  %v2674_v11 = vld [vmem:[%s3432_s24 + $0x10] sm:$0xff]   ;;  %v2675_v12 = vld [vmem:[%s3432_s24 + $0x8] sm:$0xff]   ;;  %v2676_v13 = vld [vmem:[%s3432_s24] sm:$0xff]  }
  0x13   :  { %2275 = vmatprep.mubr.msk.bf16.mxu0 %vm186_vm0, %v106_v7  ;;  %v2677_v14 = vld [vmem:[%s3432_s24 + $0x58] sm:$0xff]   ;;  %v2678_v15 = vld [vmem:[%s3432_s24 + $0x50] sm:$0xff]   ;;  %v2679_v16 = vld [vmem:[%s3432_s24 + $0x48] sm:$0xff]   ;;  %vm2256_vm0 = vcmask 1024  }
  0x14   :  { %193 = vmatpush1.bf16.msra.mxu0 %v2670_v2  ;;  %v2680_v17 = vld [vmem:[%s3432_s24 + $0x40] sm:$0xff]   ;;  %v79_v19 = vld [vmem:[%s3433_s28 + $0x10] sm:$0x3]  ;;  %v246_v32 = vld [vmem:[%s3436_s25 + $0x8] sm:$0x3]  ;;  %s3439_s24 = sld [smem:[#allocation14_spill]] }
  0x15   :  { %194 = vmatprep.subr.bf16.mxu0 %v2774_v0  ;;  %v77_v18 = vld [vmem:[%s3433_s28] sm:$0xff]  ;;  %v2681_v49 = vld [vmem:[%s3437_s1 + $0x8] sm:$0xff]   ;;  %s2777_s28 = smov 64  }
  0x16   :  { %240 = vperm.xlu0 %2668, %v232_v10   ;;  %v105_v20 = vpack.c.bf16 %v79_v19, %v77_v18  ;;  %v2262_v21 = vld [vmem:[%s3435_s2] ss:$0 sm:$0xff]  ;;  %2461 = vmatpush3.bf16.msra.mxu1 %v2681_v49 }
  0x17   :  { %v245_v26 = vld [vmem:[%s3436_s25] sm:$0xff]  ;;  %2462 = vmatprep.subr.bf16.mxu1 %v2775_v48 }
  0x18   :  { %195 = vmatpush1.bf16.msra.mxu0 %v2671_v3  ;;  %v2682_v50 = vld [vmem:[%s3437_s1] sm:$0xff]  }
  0x19   :  { %196 = vmatprep.subr.bf16.mxu0 %v2774_v0  ;;  %v2276_v59 = vld [vmem:[%s3438_s4] ss:$0 sm:$0xff] }
  0x1a   :  { %2463 = vmatpush3.bf16.msra.mxu1 %v2682_v50  ;;  %v2277_v63 = vld [vmem:[%s3439_s24] ss:$0 sm:$0xff] }
  0x1b   :  { %2468 = vmatprep.subr.bf16.mxu1 %v2775_v48 }
  0x1c   :  { %197 = vmatpush1.bf16.msra.mxu0 %v2672_v4  ;;  %v2278_v4 = vld [vmem:[%s3399_s8] ss:$0 sm:$0xff] }
  0x1d   :  { %198 = vmatprep.subr.bf16.mxu0 %v2774_v0 }
  0x20   :  { %199 = vmatpush1.bf16.msra.mxu0 %v2673_v9 }
  0x21   :  { %200 = vmatprep.subr.bf16.mxu0 %v2774_v0 }
  0x24   :  { %201 = vmatpush1.bf16.msra.mxu0 %v2674_v11 }
  0x25   :  { %202 = vmatprep.subr.bf16.mxu0 %v2774_v0 }
  0x28   :  { %203 = vmatpush1.bf16.msra.mxu0 %v2675_v12 }
  0x29   :  { %204 = vmatprep.subr.bf16.mxu0 %v2774_v0 }
  0x2c   :  { %205 = vmatpush1.bf16.msra.mxu0 %v2676_v13 }
  0x2d   :  { %214 = vmatprep.subr.bf16.mxu0 %v2774_v0 }
  0x30   :  { %215 = vmatpush2.bf16.msra.mxu0 %v2677_v14 }
  0x31   :  { %216 = vmatprep.subr.bf16.mxu0 %v2774_v0 }
  0x34   :  { %217 = vmatpush2.bf16.msra.mxu0 %v2678_v15  ;;  %v2779_v15 = vmov 65535  }
  0x35   :  { %218 = vmatprep.subr.bf16.mxu0 %v2774_v0 }
  0x38   :  { %219 = vmatpush2.bf16.msra.mxu0 %v2679_v16  ;;  %v443_v16 = vsel %vm441_vm7, 4294967295, %v2779_v15 }
  0x39   :  { %220 = vmatprep.subr.bf16.mxu0 %v2774_v0  ;;  %v3011_v18 = vsel %vm442_vm8, %v443_v16, 0 }
  0x3c   :  { %221 = vmatpush2.bf16.msra.mxu0 %v2680_v17 }
  0x3d   :  { %2510 = vmatprep.subr.bf16.mxu0 %v2775_v48 }
  0x3f   :  { %223 = vmatmul.mubr.bf16.vlgmr.msra.gmra.mxu0 %v105_v20 }
  0x40   :  { %2512 = vmatprep.mubr.msk.bf16.mxu0 %vm2776_vm3, %v2775_v48 }
  0x8d   :  { %v236_v22 = vpop.permute.xlu0 %235 }
  0x91   :  { %v241_v31 = vpop.permute.xlu0 %240 }
  0xff   :  { %v224_v23 = vpop.f32.mrf.mxu0 }
 0x100   :  { %v225_v24 = vadd.f32 %v2262_v21, %v224_v23 }
 0x101   :  { %v226_v25 = vpop.f32.mrf.mxu0 }
 0x102   :  { %v243_v27 = vmul.f32 %v236_v22, %v225_v24 }
 0x103   :  { %v227_v28 = vpop.f32.mrf.mxu0 }
 0x104   :  { %v228_v29 = vadd.f32 %v2262_v21, %v227_v28  ;;  %v2964_v30 = vadd.f32 %v245_v26, %v243_v27 }
 0x105   :  { %v229_v33 = vpop.f32.mrf.mxu0 }
 0x106   :  { %v244_v34 = vmul.f32 %v241_v31, %v228_v29  ;;  %v252_v35 = vsel %vm251_vm1, %v2964_v30, 0.0 }
 0x107   :  { %253 = vadd.xlane.f32.xlu1 %v252_v35 }
 0x108   :  { %v2971_v36 = vadd.f32 %v246_v32, %v244_v34 }
 0x10a   :  { %v256_v37 = vsel %vm255_vm2, %v2971_v36, 0.0 }
 0x10b   :  { %257 = vadd.xlane.f32.xlu1 %v256_v37 }
 0x190   :  { %v254_v38 = vpop.xlane.xlu1 %253 }
 0x191   :  { %v260_v39 = vmul.f32 0.03125, %v254_v38 }
 0x193   :  { %v262_v40 = vsub.f32 %v2964_v30, %v260_v39 }
 0x194   :  { %v258_v41 = vpop.xlane.xlu1 %257 }
 0x195   :  { %v261_v42 = vmul.f32 0.03125, %v258_v41  ;;  %v264_v43 = vmul.f32 %v262_v40, %v262_v40 }
 0x197   :  { %v263_v44 = vsub.f32 %v2971_v36, %v261_v42  ;;  %v266_v45 = vsel %vm251_vm1, %v264_v43, 0.0 }
 0x198   :  { %267 = vadd.xlane.f32.xlu0 %v266_v45 }
 0x199   :  { %v265_v46 = vmul.f32 %v263_v44, %v263_v44 }
 0x19b   :  { %v269_v47 = vsel %vm255_vm2, %v265_v46, 0.0 }
 0x19c   :  { %270 = vadd.xlane.f32.xlu1 %v269_v47 }
 0x221   :  { %v268_v51 = vpop.xlane.xlu0 %267 }
 0x222   :  { %v272_v52 = vmul.f32 0.03125, %v268_v51 }
 0x224   :  { %v274_v53 = vadd.f32 1e-06, %v272_v52 }
 0x225   :  { %v271_v54 = vpop.xlane.xlu1 %270 }
 0x226   :  { %2712 = vrsqrt.f32 %v274_v53  ;;  %v273_v55 = vmul.f32 0.03125, %v271_v54 }
 0x228   :  { %v275_v56 = vadd.f32 1e-06, %v273_v55 }
 0x22a   :  { %2714 = vrsqrt.f32 %v275_v56 }
 0x233   :  { %v2713_v57 = vpop.eup %2712 }
 0x234   :  { %v278_v58 = vmul.f32 %v2713_v57, %v262_v40 }
 0x236   :  { %v286_v62 = vmul.f32 %v2276_v59, %v278_v58 }
 0x237   :  { %v2715_v60 = vpop.eup %2714 }
 0x238   :  { %v279_v61 = vmul.f32 %v2715_v60, %v263_v44  ;;  %v294_v1 = vadd.f32 %v2277_v63, %v286_v62 }
 0x23a   :  { %v287_v0 = vmul.f32 %v2276_v59, %v279_v61 }
 0x23c   :  { %v295_v2 = vadd.f32 %v2277_v63, %v287_v0 }
 0x23e   :  { %v300_v3 = vpack.c.bf16 %v295_v2, %v294_v1 }
 0x240   :  { %2465 = vmatmul.mubr.msk.bf16.vlgmr.msra.gmra.mxu1 %vm251_vm1, %v300_v3 }
 0x241   :  { %2470 = vmatprep.mubr.msk.bf16.mxu1 %vm2776_vm3, %v2775_v48 }
 0x300   :  { %v357_v5 = vpop.f32.mrf.mxu1 }
 0x301   :  { %v358_v6 = vadd.f32 %v2278_v4, %v357_v5 }
 0x302   :  { %v2466_v7 = vpop.f32.mrf.mxu1 }
 0x303   :  { %365 = vst.msk [vmem:[#allocation3] sm:$0xff] %vm364_vm4, %v358_v6 }
 0x304   :  { %v360_v8 = vpop.f32.mrf.mxu1 }
 0x305   :  { %v361_v9 = vadd.f32 %v2278_v4, %v360_v8 }
 0x306   :  { %v2467_v10 = vpop.f32.mrf.mxu1 }
 0x307   :  { %367 = vst.msk [vmem:[#allocation3 + $0x8] sm:$0x3] %vm366_vm5, %v361_v9 }
 0x30a   :  { %v368_v11 = vld [vmem:[#allocation3] sm:$0x1f] }
 0x30b   :  { %v371_v12 = vpack.c.bf16 %v368_v11, %v368_v11  ;;  %v369_v17 = vmul.f32 0.25, %v368_v11  ;;  %v490_v27 = vld [vmem:[#allocation3] sm:$0x1f] }
 0x30c   :  { %v491_v28 = vmul.f32 0.25, %v490_v27  ;;  %v493_v37 = vpack.c.bf16 %v490_v27, %v490_v27 }
 0x30d   :  { %435 = vrot.lane.b32.xlu0 %v371_v12, %s2777_s28  ;;  %373 = vrot.lane.b32.xlu1 %v371_v12, %s2778_s7  ;;  %v370_v20 = vpack.c.bf16 %v369_v17, %v369_v17 }
 0x30e   :  { %v492_v29 = vpack.c.bf16 %v491_v28, %v491_v28  ;;  %v612_v62 = vld [vmem:[#allocation3 + $0x5] sm:$0x1f] }
 0x30f   :  { %v615_v63 = vpack.c.bf16 %v612_v62, %v612_v62  ;;  %v613_v6 = vmul.f32 0.25, %v612_v62  ;;  %v726_v17 = vld [vmem:[#allocation3 + $0x5] sm:$0x1f] }
 0x310   :  { %v729_v28 = vpack.c.bf16 %v726_v17, %v726_v17 }
 0x311   :  { %v614_v7 = vpack.c.bf16 %v613_v6, %v613_v6 }
 0x37f   :  { %v374_v13 = vpop.permute.xlu1 %373  ;;  %v436_v19 = vpop.permute.xlu0 %435 }
 0x380   :  { %v380_v14 = vsel %vm375_vm6, %v374_v13, 0  ;;  %v446_v21 = vand.u32 %v3011_v18, %v436_v19  ;;  %v727_v19 = vmul.f32 0.25, %v726_v17 }
 0x381   :  { %2469 = vmatpush3.bf16.xpose.msra.mxu1 %v380_v14 }
 0x382   :  { %2474 = vmatprep.subr.bf16.mxu1 %v2775_v48 }
 0x388   :  { %2471 = vmatmul.mubr.msk.bf16.vlgmr.msra.gmra.mxu1 %vm375_vm6, %v370_v20  ;;  %v728_v20 = vpack.c.bf16 %v727_v19, %v727_v19 }
 0x389   :  { %2475 = vmatpush3.bf16.msra.mxu1 %v446_v21  ;;  %2476 = vmatprep.mubr.msk.bf16.mxu1 %vm2776_vm3, %v2775_v48 }
 0x38a   :  { %2480 = vmatprep.subr.bf16.mxu1 %v2775_v48 }
 0x448   :  { %v416_v22 = vpop.f32.mrf.mxu1 }
 0x449   :  { %v423_v23 = vsel %vm422_vm9, %v416_v22, -inf }
 0x44a   :  { %424 = vmax.xlane.f32.xlu1 %v423_v23  ;;  %v2472_v24 = vpop.f32.mrf.mxu1 }
 0x44c   :  { %v419_v25 = vpop.f32.mrf.mxu1 }
 0x44e   :  { %v2473_v26 = vpop.f32.mrf.mxu1 }
 0x45b   :  { %495 = vrot.lane.b32.xlu1 %v492_v29, %s2780_s0 }
 0x4d3   :  { %v425_v31 = vpop.xlane.xlu1 %424 }
 0x4d4   :  { %v426_v32 = vsub.f32 %v416_v22, %v425_v31 }
 0x4d6   :  { %v427_v33 = vmul.f32 1.442695, %v426_v32 }
 0x4d7   :  { %v496_v44 = vpop.permute.xlu1 %495 }
 0x4d8   :  { %2716 = vpow2.f32 %v427_v33 }
 0x4e5   :  { %v2717_v34 = vpop.eup %2716 }
 0x4e6   :  { %v429_v35 = vsel %vm422_vm9, %v2717_v34, 0.0 }
 0x4e7   :  { %430 = vadd.xlane.f32.xlu0 %v429_v35 }
 0x4fd   :  { %498 = vrot.lane.b32.xlu0 %v493_v37, %s2781_s26 }
 0x570   :  { %v431_v38 = vpop.xlane.xlu0 %430 }
 0x571   :  { %2718 = vrcp.f32 %v431_v38 }
 0x574   :  { %v499_v41 = vpop.permute.xlu0 %498 }
 0x575   :  { %v504_v43 = vsel %vm375_vm6, %v499_v41, 0 }
 0x57e   :  { %v2719_v39 = vpop.eup %2718 }
 0x57f   :  { %v433_v40 = vmul.f32 %v2719_v39, %v2717_v34 }
 0x581   :  { %v434_v42 = vpack.c.bf16 %v433_v40, %v433_v40 }
 0x583   :  { %2477 = vmatmul.mubr.msk.bf16.vlgmr.msra.gmra.mxu1 %vm437_vm10, %v434_v42 }
 0x584   :  { %2481 = vmatpush3.bf16.xpose.msra.mxu1 %v504_v43  ;;  %2482 = vmatprep.mubr.msk.bf16.mxu1 %vm2776_vm3, %v2775_v48 }
 0x585   :  { %2486 = vmatprep.subr.bf16.mxu1 %v2775_v48 }
 0x58b   :  { %2483 = vmatmul.mubr.msk.bf16.vlgmr.msra.gmra.mxu1 %vm375_vm6, %v496_v44 }
 0x58c   :  { %2488 = vmatprep.mubr.msk.bf16.mxu1 %vm2776_vm3, %v2775_v48 }
 0x643   :  { %v482_v45 = vpop.f32.mrf.mxu1 }
 0x644   :  { %489 = vst.msk [vmem:[#allocation4] sm:$0x1f] %vm488_vm11, %v482_v45 }
 0x645   :  { %v2478_v46 = vpop.f32.mrf.mxu1 }
 0x647   :  { %v485_v47 = vpop.f32.mrf.mxu1 }
 0x649   :  { %v2479_v49 = vpop.f32.mrf.mxu1 }
 0x64b   :  { %v540_v50 = vpop.f32.mrf.mxu1 }
 0x64c   :  { %v546_v51 = vsel %vm422_vm9, %v540_v50, -inf }
 0x64d   :  { %547 = vmax.xlane.f32.xlu0 %v546_v51  ;;  %v2484_v52 = vpop.f32.mrf.mxu1 }
 0x64f   :  { %v543_v53 = vpop.f32.mrf.mxu1 }
 0x651   :  { %v2485_v54 = vpop.f32.mrf.mxu1 }
 0x663   :  { %558 = vrot.lane.b32.xlu0 %v493_v37, %s2782_s5 }
 0x6d6   :  { %v548_v55 = vpop.xlane.xlu0 %547 }
 0x6d7   :  { %v549_v56 = vsub.f32 %v540_v50, %v548_v55 }
 0x6d9   :  { %v550_v57 = vmul.f32 1.442695, %v549_v56 }
 0x6da   :  { %v559_v58 = vpop.permute.xlu0 %558 }
 0x6db   :  { %2720 = vpow2.f32 %v550_v57  ;;  %v564_v59 = vand.u32 %v559_v58, %v3011_v18 }
 0x6dd   :  { %2487 = vmatpush3.bf16.msra.mxu1 %v564_v59 }
 0x6de   :  { %2492 = vmatprep.subr.bf16.mxu1 %v2775_v48 }
 0x6e8   :  { %v2721_v60 = vpop.eup %2720 }
 0x6e9   :  { %v552_v61 = vsel %vm422_vm9, %v2721_v60, 0.0 }
 0x6ea   :  { %553 = vadd.xlane.f32.xlu1 %v552_v61  ;;  %v2684_v61 = vld [vmem:[%s3400_s9] sm:$0xff]  }
 0x6fb   :  { %617 = vrot.lane.b32.xlu1 %v615_v63, %s2778_s7 }
 0x773   :  { %v554_v0 = vpop.xlane.xlu1 %553 }
 0x774   :  { %2722 = vrcp.f32 %v554_v0 }
 0x777   :  { %v618_v3 = vpop.permute.xlu1 %617 }
 0x778   :  { %v623_v5 = vsel %vm375_vm6, %v618_v3, 0 }
 0x781   :  { %v2723_v1 = vpop.eup %2722 }
 0x782   :  { %v556_v2 = vmul.f32 %v2723_v1, %v2721_v60  ;;  %v2683_v60 = vld [vmem:[%s3400_s9 + $0x8] sm:$0xff]  }
 0x784   :  { %v557_v4 = vpack.c.bf16 %v556_v2, %v556_v2 }
 0x786   :  { %2489 = vmatmul.mubr.msk.bf16.vlgmr.msra.gmra.mxu1 %vm437_vm10, %v557_v4 }
 0x787   :  { %2493 = vmatpush3.bf16.xpose.msra.mxu1 %v623_v5  ;;  %2494 = vmatprep.mubr.msk.bf16.mxu1 %vm2776_vm3, %v2775_v48 }
 0x788   :  { %2498 = vmatprep.subr.bf16.mxu1 %v2775_v48 }
 0x78e   :  { %2495 = vmatmul.mubr.msk.bf16.vlgmr.msra.gmra.mxu1 %vm375_vm6, %v614_v7  ;;  %v2293_v7 = vld [vmem:[%s3401_s10] ss:$0 sm:$0xff] }
 0x78f   :  { %2500 = vmatprep.mubr.msk.bf16.mxu1 %vm2776_vm3, %v2775_v48 }
 0x846   :  { %v3045_v8 = vpop.f32.mrf.mxu1 }
 0x848   :  { %v2490_v9 = vpop.f32.mrf.mxu1 }
 0x84a   :  { %v603_v10 = vpop.f32.mrf.mxu1 }
 0x84c   :  { %v2491_v11 = vpop.f32.mrf.mxu1 }
 0x84e   :  { %v659_v12 = vpop.f32.mrf.mxu1 }
 0x84f   :  { %v665_v13 = vsel %vm422_vm9, %v659_v12, -inf }
 0x850   :  { %666 = vmax.xlane.f32.xlu0 %v665_v13  ;;  %v2496_v14 = vpop.f32.mrf.mxu1 }
 0x852   :  { %v662_v15 = vpop.f32.mrf.mxu1 }
 0x854   :  { %v2497_v16 = vpop.f32.mrf.mxu1 }
 0x866   :  { %677 = vrot.lane.b32.xlu0 %v615_v63, %s2777_s28 }
 0x86a   :  { %731 = vrot.lane.b32.xlu0 %v728_v20, %s2780_s0 }
 0x8d9   :  { %v667_v21 = vpop.xlane.xlu0 %666 }
 0x8da   :  { %v668_v22 = vsub.f32 %v659_v12, %v667_v21 }
 0x8dc   :  { %v669_v23 = vmul.f32 1.442695, %v668_v22 }
 0x8dd   :  { %v678_v24 = vpop.permute.xlu0 %677 }
 0x8de   :  { %2724 = vpow2.f32 %v669_v23  ;;  %v683_v25 = vand.u32 %v678_v24, %v3011_v18 }
 0x8e0   :  { %2499 = vmatpush3.bf16.msra.mxu1 %v683_v25 }
 0x8e1   :  { %2504 = vmatprep.subr.bf16.mxu1 %v2775_v48  ;;  %v732_v37 = vpop.permute.xlu0 %731 }
 0x8eb   :  { %v2725_v26 = vpop.eup %2724 }
 0x8ec   :  { %v671_v27 = vsel %vm422_vm9, %v2725_v26, 0.0 }
 0x8ed   :  { %672 = vadd.xlane.f32.xlu1 %v671_v27  ;;  %v2686_v27 = vld [vmem:[%s3402_s13] sm:$0xff]  }
 0x8fe   :  { %734 = vrot.lane.b32.xlu1 %v729_v28, %s2781_s26 }
 0x976   :  { %v673_v29 = vpop.xlane.xlu1 %672 }
 0x977   :  { %2726 = vrcp.f32 %v673_v29 }
 0x97a   :  { %v735_v33 = vpop.permute.xlu1 %734 }
 0x97b   :  { %v740_v35 = vsel %vm375_vm6, %v735_v33, 0 }
 0x984   :  { %v2727_v31 = vpop.eup %2726 }
 0x985   :  { %v675_v32 = vmul.f32 %v2727_v31, %v2725_v26  ;;  %v2685_v26 = vld [vmem:[%s3402_s13 + $0x8] sm:$0xff]  }
 0x987   :  { %v676_v34 = vpack.c.bf16 %v675_v32, %v675_v32 }
 0x989   :  { %2501 = vmatmul.mubr.msk.bf16.vlgmr.msra.gmra.mxu1 %vm437_vm10, %v676_v34 }
 0x98a   :  { %2505 = vmatpush3.bf16.xpose.msra.mxu1 %v740_v35  ;;  %2506 = vmatprep.mubr.msk.bf16.mxu1 %vm2776_vm3, %v2775_v48 }
 0x98b   :  { %2516 = vmatprep.subr.bf16.mxu1 %v2775_v48 }
 0x991   :  { %2507 = vmatmul.mubr.msk.bf16.vlgmr.msra.gmra.mxu1 %vm375_vm6, %v732_v37 }
 0x992   :  { %2520 = vmatprep.mubr.msk.bf16.mxu1 %vm2776_vm3, %v2775_v48  ;;  %2517 = vmatpush3.bf16.msra.mxu1 %v2683_v60 }
 0x993   :  { %2518 = vmatprep.subr.bf16.mxu1 %v2775_v48 }
 0x996   :  { %2519 = vmatpush3.bf16.msra.mxu1 %v2684_v61 }
 0x997   :  { %2532 = vmatprep.subr.bf16.mxu1 %v2775_v48 }
 0xa49   :  { %v719_v38 = vpop.f32.mrf.mxu1 }
 0xa4a   :  { %725 = vst.msk [vmem:[#allocation4 + $0x5] sm:$0x1f] %vm488_vm11, %v719_v38 }
 0xa4b   :  { %v2502_v39 = vpop.f32.mrf.mxu1 }
 0xa4c   :  { %v2294_v39 = vld [vmem:[%s3404_s11] ss:$0 sm:$0xff] }
 0xa4d   :  { %v722_v40 = vpop.f32.mrf.mxu1 }
 0xa4f   :  { %v2503_v41 = vpop.f32.mrf.mxu1 }
 0xa51   :  { %v776_v42 = vpop.f32.mrf.mxu1 }
 0xa52   :  { %v782_v43 = vsel %vm422_vm9, %v776_v42, -inf }
 0xa53   :  { %783 = vmax.xlane.f32.xlu0 %v782_v43  ;;  %v2508_v44 = vpop.f32.mrf.mxu1  ;;  %v2295_v43 = vld [vmem:[%s3405_s12] ss:$0 sm:$0xff] }
 0xa55   :  { %v779_v45 = vpop.f32.mrf.mxu1 }
 0xa57   :  { %v2509_v46 = vpop.f32.mrf.mxu1 }
 0xa69   :  { %794 = vrot.lane.b32.xlu0 %v729_v28, %s2782_s5  ;;  %v2687_v28 = vld [vmem:[%s3403_s15 + $0x38] sm:$0xff]  }
 0xadc   :  { %v784_v47 = vpop.xlane.xlu0 %783 }
 0xadd   :  { %v785_v49 = vsub.f32 %v776_v42, %v784_v47 }
 0xadf   :  { %v786_v50 = vmul.f32 1.442695, %v785_v49  ;;  %v2688_v49 = vld [vmem:[%s3403_s15 + $0x30] sm:$0xff]  }
 0xae0   :  { %v795_v51 = vpop.permute.xlu0 %794 }
 0xae1   :  { %2728 = vpow2.f32 %v786_v50  ;;  %v800_v52 = vand.u32 %v795_v51, %v3011_v18  ;;  %v2689_v50 = vld [vmem:[%s3403_s15 + $0x28] sm:$0xff]   ;;  %v2690_v51 = vld [vmem:[%s3403_s15 + $0x20] sm:$0xff]  }
 0xae3   :  { %2511 = vmatpush3.bf16.msra.mxu0 %v800_v52  ;;  %v2691_v52 = vld [vmem:[%s3403_s15 + $0x18] sm:$0xff]  }
 0xae4   :  { %2524 = vmatprep.subr.bf16.mxu0 %v2775_v48 }
 0xaee   :  { %v2729_v53 = vpop.eup %2728 }
 0xaef   :  { %v788_v54 = vsel %vm422_vm9, %v2729_v53, 0.0 }
 0xaf0   :  { %789 = vadd.xlane.f32.xlu1 %v788_v54  ;;  %v2693_v54 = vld [vmem:[%s3403_s15 + $0x8] sm:$0xff]  }
 0xb01   :  { %607 = vrot.lane.b32.xlu1 %v3045_v8, %s3422_s27 }
 0xb79   :  { %v790_v55 = vpop.xlane.xlu1 %789 }
 0xb7a   :  { %2730 = vrcp.f32 %v790_v55  ;;  %v2694_v55 = vld [vmem:[%s3403_s15] sm:$0xff]  }
 0xb7d   :  { %v608_v56 = vpop.permute.xlu1 %607 }
 0xb7e   :  { %611 = vst.msk [vmem:[#allocation4] sm:$0x1f] %vm610_vm12, %v608_v56  ;;  %v2296_v56 = vld [vmem:[%s3406_s14] ss:$0 sm:$0xff] }
 0xb87   :  { %v2731_v57 = vpop.eup %2730 }
 0xb88   :  { %v792_v58 = vmul.f32 %v2731_v57, %v2729_v53  ;;  %v2692_v53 = vld [vmem:[%s3403_s15 + $0x10] sm:$0xff]  }
 0xb8a   :  { %v793_v59 = vpack.c.bf16 %v792_v58, %v792_v58 }
 0xb8c   :  { %2513 = vmatmul.mubr.msk.bf16.vlgmr.msra.gmra.mxu0 %vm437_vm10, %v793_v59 }
 0xb8d   :  { %2528 = vmatprep.mubr.msk.bf16.mxu0 %vm2776_vm3, %v2775_v48  ;;  %2525 = vmatpush3.bf16.msra.mxu0 %v2685_v26 }
 0xb8e   :  { %2526 = vmatprep.subr.bf16.mxu0 %v2775_v48 }
 0xb91   :  { %2527 = vmatpush3.bf16.msra.mxu0 %v2686_v27 }
 0xb92   :  { %2552 = vmatprep.subr.bf16.mxu0 %v2775_v48 }
 0xc4c   :  { %v836_v62 = vpop.f32.mrf.mxu0 }
 0xc4d   :  { %843 = vrot.lane.b32.xlu0 %v836_v62, %s3422_s27 }
 0xc4e   :  { %v2514_v63 = vpop.f32.mrf.mxu0 }
 0xc50   :  { %v839_v0 = vpop.f32.mrf.mxu0 }
 0xc52   :  { %v2515_v1 = vpop.f32.mrf.mxu0 }
 0xcbf   :  { %v844_v2 = vpop.permute.xlu0 %843 }
 0xcc0   :  { %846 = vst.msk [vmem:[#allocation4 + $0x5] sm:$0x1f] %vm610_vm12, %v844_v2 }
 0xcc7   :  { %v847_v3 = vld [vmem:[#allocation4] sm:$0xff]  ;;  %v848_v4 = vld [vmem:[#allocation4 + $0x8] sm:$0x3] }
 0xcc8   :  { %v853_v5 = vpack.c.bf16 %v848_v4, %v847_v3 }
 0xcca   :  { %2521 = vmatmul.mubr.msk.bf16.vlgmr.msra.gmra.mxu1 %vm251_vm1, %v853_v5 }
 0xccb   :  { %2548 = vmatprep.mubr.msk.bf16.mxu1 %vm2776_vm3, %v2775_v48  ;;  %2533 = vmatpush3.bf16.msra.mxu1 %v2687_v28 }
 0xccc   :  { %2534 = vmatprep.subr.bf16.mxu1 %v2775_v48 }
 0xccf   :  { %2535 = vmatpush3.bf16.msra.mxu1 %v2688_v49 }
 0xcd0   :  { %2536 = vmatprep.subr.bf16.mxu1 %v2775_v48 }
 0xcd3   :  { %2537 = vmatpush3.bf16.msra.mxu1 %v2689_v50 }
 0xcd4   :  { %2538 = vmatprep.subr.bf16.mxu1 %v2775_v48 }
 0xcd7   :  { %2539 = vmatpush3.bf16.msra.mxu1 %v2690_v51 }
 0xcd8   :  { %2540 = vmatprep.subr.bf16.mxu1 %v2775_v48 }
 0xcdb   :  { %2541 = vmatpush3.bf16.msra.mxu1 %v2691_v52  ;;  %v2318_v52 = vld [vmem:[%s3399_s8 + $0x1] ss:$0 sm:$0xff]  ;;  %s3440_s8 = smov 16  }
 0xcdc   :  { %2542 = vmatprep.subr.bf16.mxu1 %v2775_v48 }
 0xcdf   :  { %2543 = vmatpush3.bf16.msra.mxu1 %v2692_v53 }
 0xce0   :  { %2544 = vmatprep.subr.bf16.mxu1 %v2775_v48 }
 0xce3   :  { %2545 = vmatpush3.bf16.msra.mxu1 %v2693_v54 }
 0xce4   :  { %2546 = vmatprep.subr.bf16.mxu1 %v2775_v48 }
 0xce7   :  { %2547 = vmatpush3.bf16.msra.mxu1 %v2694_v55 }
 0xce8   :  { %2578 = vmatprep.subr.bf16.mxu1 %v2775_v48 }
 0xd8a   :  { %v903_v6 = vpop.f32.mrf.mxu1 }
 0xd8b   :  { %v910_v8 = vadd.f32 %v903_v6, %v2964_v30 }
 0xd8c   :  { %v2522_v9 = vpop.f32.mrf.mxu1 }
 0xd8d   :  { %v3091_v10 = vadd.f32 %v2293_v7, %v910_v8 }
 0xd8e   :  { %v906_v11 = vpop.f32.mrf.mxu1 }
 0xd8f   :  { %v911_v12 = vadd.f32 %v906_v11, %v2971_v36  ;;  %v923_v13 = vsel %vm251_vm1, %v3091_v10, 0.0 }
 0xd90   :  { %924 = vadd.xlane.f32.xlu0 %v923_v13  ;;  %v2523_v14 = vpop.f32.mrf.mxu1 }
 0xd91   :  { %v3096_v15 = vadd.f32 %v2293_v7, %v911_v12  ;;  %v2308_v12 = vld [vmem:[%s3407_s16] ss:$0 sm:$0xff] }
 0xd93   :  { %v926_v16 = vsel %vm255_vm2, %v3096_v15, 0.0 }
 0xd94   :  { %927 = vadd.xlane.f32.xlu1 %v926_v16 }
 0xe19   :  { %v925_v17 = vpop.xlane.xlu0 %924 }
 0xe1a   :  { %v929_v19 = vmul.f32 0.03125, %v925_v17 }
 0xe1c   :  { %v931_v30 = vsub.f32 %v3091_v10, %v929_v19 }
 0xe1d   :  { %v928_v20 = vpop.xlane.xlu1 %927 }
 0xe1e   :  { %v930_v21 = vmul.f32 0.03125, %v928_v20  ;;  %v933_v22 = vmul.f32 %v931_v30, %v931_v30 }
 0xe20   :  { %v932_v36 = vsub.f32 %v3096_v15, %v930_v21  ;;  %v935_v23 = vsel %vm251_vm1, %v933_v22, 0.0 }
 0xe21   :  { %936 = vadd.xlane.f32.xlu0 %v935_v23 }
 0xe22   :  { %v934_v24 = vmul.f32 %v932_v36, %v932_v36 }
 0xe24   :  { %v938_v25 = vsel %vm255_vm2, %v934_v24, 0.0 }
 0xe25   :  { %939 = vadd.xlane.f32.xlu0 %v938_v25 }
 0xeaa   :  { %v937_v29 = vpop.xlane.xlu0 %936 }
 0xeab   :  { %v941_v31 = vmul.f32 0.03125, %v937_v29 }
 0xead   :  { %v943_v32 = vadd.f32 1e-06, %v941_v31  ;;  %v2695_v31 = vld [vmem:[%s3437_s1 + $0x18] sm:$0xff]  }
 0xeae   :  { %v940_v33 = vpop.xlane.xlu0 %939 }
 0xeaf   :  { %2732 = vrsqrt.f32 %v943_v32  ;;  %v942_v34 = vmul.f32 0.03125, %v940_v33  ;;  %v2696_v32 = vld [vmem:[%s3437_s1 + $0x10] sm:$0xff]  }
 0xeb1   :  { %v944_v35 = vadd.f32 1e-06, %v942_v34 }
 0xeb3   :  { %2734 = vrsqrt.f32 %v944_v35 }
 0xebc   :  { %v2733_v37 = vpop.eup %2732 }
 0xebd   :  { %v947_v38 = vmul.f32 %v2733_v37, %v931_v30 }
 0xebf   :  { %v955_v42 = vmul.f32 %v2294_v39, %v947_v38 }
 0xec0   :  { %v2735_v40 = vpop.eup %2734 }
 0xec1   :  { %v948_v41 = vmul.f32 %v2735_v40, %v932_v36  ;;  %v963_v45 = vadd.f32 %v2295_v43, %v955_v42 }
 0xec3   :  { %v956_v44 = vmul.f32 %v2294_v39, %v948_v41  ;;  %v2311_v41 = vld [vmem:[%s3438_s4 + $0x1] ss:$0 sm:$0xff] }
 0xec5   :  { %v964_v46 = vadd.f32 %v2295_v43, %v956_v44  ;;  %v2312_v43 = vld [vmem:[%s3439_s24 + $0x1] ss:$0 sm:$0xff] }
 0xec7   :  { %v969_v47 = vpack.c.bf16 %v964_v46, %v963_v45 }
 0xec9   :  { %2529 = vmatmul.mubr.msk.bf16.vlgmr.msra.gmra.mxu0 %vm251_vm1, %v969_v47 }
 0xeca   :  { %2556 = vmatprep.mubr.msk.bf16.mxu0 %vm2776_vm3, %v2775_v48  ;;  %2553 = vmatpush3.bf16.msra.mxu0 %v2695_v31 }
 0xecb   :  { %2554 = vmatprep.subr.bf16.mxu0 %v2775_v48 }
 0xece   :  { %2555 = vmatpush3.bf16.msra.mxu0 %v2696_v32 }
 0xecf   :  { %2560 = vmatprep.subr.bf16.mxu0 %v2775_v48 }
 0xf89   :  { %v1026_v57 = vpop.f32.mrf.mxu0 }
 0xf8a   :  { %v1027_v58 = vadd.f32 %v2296_v56, %v1026_v57 }
 0xf8b   :  { %v2530_v59 = vpop.f32.mrf.mxu0 }
 0xf8c   :  { %v1035_v60 = vmul.f32 0.70710677, %v1027_v58  ;;  %v1033_v4 = vmul.f32 0.5, %v1027_v58 }
 0xf8d   :  { %v1029_v61 = vpop.f32.mrf.mxu0 }
 0xf8e   :  { %2736 = verf.f32 %v1035_v60  ;;  %v1030_v62 = vadd.f32 %v2296_v56, %v1029_v61 }
 0xf8f   :  { %v2531_v63 = vpop.f32.mrf.mxu0 }
 0xf90   :  { %v1036_v0 = vmul.f32 0.70710677, %v1030_v62  ;;  %v1034_v5 = vmul.f32 0.5, %v1030_v62 }
 0xf92   :  { %2738 = verf.f32 %v1036_v0 }
 0xf9b   :  { %v2737_v1 = vpop.eup %2736 }
 0xf9c   :  { %v1039_v2 = vadd.f32 1.0, %v2737_v1 }
 0xf9e   :  { %v1041_v7 = vmul.f32 %v1039_v2, %v1033_v4 }
 0xf9f   :  { %v2739_v3 = vpop.eup %2738 }
 0xfa0   :  { %v1040_v6 = vadd.f32 1.0, %v2739_v3 }
 0xfa2   :  { %v1042_v8 = vmul.f32 %v1040_v6, %v1034_v5 }
 0xfa4   :  { %v1059_v9 = vpack.c.bf16 %v1042_v8, %v1041_v7 }
 0xfa6   :  { %2549 = vmatmul.mubr.bf16.vlgmr.msra.gmra.mxu1 %v1059_v9 }
 0xfa7   :  { %2580 = vmatprep.mubr.msk.bf16.mxu1 %vm2776_vm3, %v2775_v48 }
0x1066   :  { %v1142_v11 = vpop.f32.mrf.mxu1 }
0x1067   :  { %v1149_v13 = vadd.f32 %v1142_v11, %v3091_v10 }
0x1068   :  { %v2550_v14 = vpop.f32.mrf.mxu1 }
0x1069   :  { %v3162_v16 = vadd.f32 %v2308_v12, %v1149_v13 }
0x106a   :  { %v1145_v17 = vpop.f32.mrf.mxu1 }
0x106b   :  { %v1150_v19 = vadd.f32 %v1145_v17, %v3096_v15  ;;  %v1164_v30 = vsel %vm251_vm1, %v3162_v16, 0.0 }
0x106c   :  { %1165 = vadd.xlane.f32.xlu0 %v1164_v30  ;;  %v2551_v20 = vpop.f32.mrf.mxu1 }
0x106d   :  { %v3167_v21 = vadd.f32 %v2308_v12, %v1150_v19 }
0x106f   :  { %v1167_v22 = vsel %vm255_vm2, %v3167_v21, 0.0 }
0x1070   :  { %1168 = vadd.xlane.f32.xlu1 %v1167_v22 }
0x10f5   :  { %v1166_v36 = vpop.xlane.xlu0 %1165 }
0x10f6   :  { %v1170_v23 = vmul.f32 0.03125, %v1166_v36 }
0x10f8   :  { %v1172_v10 = vsub.f32 %v3162_v16, %v1170_v23 }
0x10f9   :  { %v1169_v24 = vpop.xlane.xlu1 %1168 }
0x10fa   :  { %v1171_v25 = vmul.f32 0.03125, %v1169_v24  ;;  %v1174_v26 = vmul.f32 %v1172_v10, %v1172_v10 }
0x10fc   :  { %v1173_v15 = vsub.f32 %v3167_v21, %v1171_v25  ;;  %v1176_v27 = vsel %vm251_vm1, %v1174_v26, 0.0 }
0x10fd   :  { %1177 = vadd.xlane.f32.xlu0 %v1176_v27 }
0x10fe   :  { %v1175_v28 = vmul.f32 %v1173_v15, %v1173_v15 }
0x1100   :  { %v1179_v29 = vsel %vm255_vm2, %v1175_v28, 0.0 }
0x1101   :  { %1180 = vadd.xlane.f32.xlu1 %v1179_v29 }
0x1186   :  { %v1178_v33 = vpop.xlane.xlu0 %1177 }
0x1187   :  { %v1182_v34 = vmul.f32 0.03125, %v1178_v33 }
0x1189   :  { %v1184_v35 = vadd.f32 1e-06, %v1182_v34 }
0x118a   :  { %v1181_v37 = vpop.xlane.xlu1 %1180 }
0x118b   :  { %2740 = vrsqrt.f32 %v1184_v35  ;;  %v1183_v38 = vmul.f32 0.03125, %v1181_v37 }
0x118d   :  { %v1185_v39 = vadd.f32 1e-06, %v1183_v38 }
0x118f   :  { %2742 = vrsqrt.f32 %v1185_v39 }
0x1198   :  { %v2741_v40 = vpop.eup %2740 }
0x1199   :  { %v1188_v42 = vmul.f32 %v2741_v40, %v1172_v10 }
0x119b   :  { %v1196_v44 = vmul.f32 %v2311_v41, %v1188_v42 }
0x119c   :  { %v2743_v45 = vpop.eup %2742 }
0x119d   :  { %v1189_v46 = vmul.f32 %v2743_v45, %v1173_v15  ;;  %v1204_v47 = vadd.f32 %v2312_v43, %v1196_v44 }
0x119f   :  { %v1197_v49 = vmul.f32 %v2311_v41, %v1189_v46 }
0x11a1   :  { %v1205_v50 = vadd.f32 %v2312_v43, %v1197_v49 }
0x11a3   :  { %v1211_v51 = vpack.c.bf16 %v1205_v50, %v1204_v47 }
0x11a5   :  { %2557 = vmatmul.mubr.msk.bf16.vlgmr.msra.gmra.mxu0 %vm251_vm1, %v1211_v51 }
0x11a6   :  { %2562 = vmatprep.mubr.msk.bf16.mxu0 %vm2776_vm3, %v2775_v48 }
0x1265   :  { %v1269_v53 = vpop.f32.mrf.mxu0 }
0x1266   :  { %v1270_v54 = vadd.f32 %v2318_v52, %v1269_v53 }
0x1267   :  { %v2558_v55 = vpop.f32.mrf.mxu0 }
0x1268   :  { %1276 = vst.msk [vmem:[#allocation3] sm:$0xff] %vm364_vm4, %v1270_v54 }
0x1269   :  { %v1272_v56 = vpop.f32.mrf.mxu0 }
0x126a   :  { %v1273_v57 = vadd.f32 %v2318_v52, %v1272_v56 }
0x126b   :  { %v2559_v58 = vpop.f32.mrf.mxu0 }
0x126c   :  { %1277 = vst.msk [vmem:[#allocation3 + $0x8] sm:$0x3] %vm366_vm5, %v1273_v57 }
0x126f   :  { %v1278_v59 = vld [vmem:[#allocation3] sm:$0x1f] }
0x1270   :  { %v1281_v60 = vpack.c.bf16 %v1278_v59, %v1278_v59  ;;  %v1392_v61 = vld [vmem:[#allocation3] sm:$0x1f]  ;;  %v1279_v5 = vmul.f32 0.25, %v1278_v59 }
0x1271   :  { %v3198_v62 = vpack.c.bf16 %v1392_v61, %v1392_v61  ;;  %v1393_v63 = vmul.f32 0.25, %v1392_v61 }
0x1272   :  { %1283 = vrot.lane.b32.xlu0 %v1281_v60, %s2778_s7  ;;  %v1280_v6 = vpack.c.bf16 %v1279_v5, %v1279_v5 }
0x1273   :  { %v1394_v0 = vpack.c.bf16 %v1393_v63, %v1393_v63  ;;  %v1627_v1 = vld [vmem:[#allocation3 + $0x5] sm:$0x1f] }
0x1274   :  { %v3203_v2 = vpack.c.bf16 %v1627_v1, %v1627_v1  ;;  %v1513_v20 = vld [vmem:[#allocation3 + $0x5] sm:$0x1f]  ;;  %v1628_v36 = vmul.f32 0.25, %v1627_v1 }
0x1275   :  { %v3215_v22 = vpack.c.bf16 %v1513_v20, %v1513_v20  ;;  %v1514_v34 = vmul.f32 0.25, %v1513_v20 }
0x1276   :  { %1400 = vrot.lane.b32.xlu0 %v3198_v62, %s2781_s26  ;;  %v1629_v23 = vpack.c.bf16 %v1628_v36, %v1628_v36 }
0x1277   :  { %v1515_v37 = vpack.c.bf16 %v1514_v34, %v1514_v34 }
0x127a   :  { %1397 = vrot.lane.b32.xlu0 %v1394_v0, %s2780_s0 }
0x127e   :  { %1635 = vrot.lane.b32.xlu0 %v3203_v2, %s2781_s26 }
0x12e4   :  { %v1284_v3 = vpop.permute.xlu0 %1283 }
0x12e5   :  { %v1289_v4 = vsel %vm375_vm6, %v1284_v3, 0 }
0x12e6   :  { %2561 = vmatpush3.bf16.xpose.msra.mxu0 %v1289_v4 }
0x12e7   :  { %2566 = vmatprep.subr.bf16.mxu0 %v2775_v48 }
0x12e8   :  { %v1401_v27 = vpop.permute.xlu0 %1400 }
0x12e9   :  { %v1406_v29 = vsel %vm375_vm6, %v1401_v27, 0 }
0x12ec   :  { %v1398_v32 = vpop.permute.xlu0 %1397 }
0x12ed   :  { %2563 = vmatmul.mubr.msk.bf16.vlgmr.msra.gmra.mxu0 %vm375_vm6, %v1280_v6 }
0x12ee   :  { %2568 = vmatprep.mubr.msk.bf16.mxu0 %vm2776_vm3, %v2775_v48 }
0x12f0   :  { %v1636_v35 = vpop.permute.xlu0 %1635 }
0x12f1   :  { %v1641_v38 = vsel %vm375_vm6, %v1636_v35, 0  ;;  %v2698_v35 = vld [vmem:[%s3400_s9 + $0x10] sm:$0xff]  }
0x13ad   :  { %v1325_v7 = vpop.f32.mrf.mxu0 }
0x13ae   :  { %v1331_v8 = vsel %vm422_vm9, %v1325_v7, -inf }
0x13af   :  { %1332 = vmax.xlane.f32.xlu1 %v1331_v8  ;;  %v2564_v9 = vpop.f32.mrf.mxu0 }
0x13b1   :  { %v1328_v11 = vpop.f32.mrf.mxu0 }
0x13b3   :  { %v2565_v12 = vpop.f32.mrf.mxu0 }
0x1438   :  { %v1333_v13 = vpop.xlane.xlu1 %1332 }
0x1439   :  { %v1334_v14 = vsub.f32 %v1325_v7, %v1333_v13 }
0x143b   :  { %v1335_v17 = vmul.f32 1.442695, %v1334_v14 }
0x143d   :  { %2744 = vpow2.f32 %v1335_v17 }
0x144a   :  { %v2745_v19 = vpop.eup %2744 }
0x144b   :  { %v1337_v30 = vsel %vm422_vm9, %v2745_v19, 0.0 }
0x144c   :  { %1338 = vadd.xlane.f32.xlu1 %v1337_v30 }
0x145d   :  { %1343 = vrot.lane.b32.xlu1 %v1281_v60, %s2777_s28 }
0x1461   :  { %1518 = vrot.lane.b32.xlu1 %v3215_v22, %s2778_s7 }
0x1465   :  { %1632 = vrot.lane.b32.xlu1 %v1629_v23, %s2780_s0 }
0x14d5   :  { %v1339_v10 = vpop.xlane.xlu1 %1338 }
0x14d6   :  { %2746 = vrcp.f32 %v1339_v10 }
0x14d9   :  { %v1344_v24 = vpop.permute.xlu1 %1343 }
0x14da   :  { %v1349_v25 = vand.u32 %v1344_v24, %v3011_v18 }
0x14dc   :  { %2567 = vmatpush3.bf16.msra.mxu0 %v1349_v25 }
0x14dd   :  { %2572 = vmatprep.subr.bf16.mxu0 %v2775_v48  ;;  %v1519_v31 = vpop.permute.xlu1 %1518 }
0x14de   :  { %v1524_v33 = vsel %vm375_vm6, %v1519_v31, 0 }
0x14e1   :  { %v1633_v39 = vpop.permute.xlu1 %1632 }
0x14e3   :  { %v2747_v26 = vpop.eup %2746 }
0x14e4   :  { %v1341_v15 = vmul.f32 %v2747_v26, %v2745_v19 }
0x14e6   :  { %v1342_v28 = vpack.c.bf16 %v1341_v15, %v1341_v15 }
0x14e8   :  { %2569 = vmatmul.mubr.msk.bf16.vlgmr.msra.gmra.mxu0 %vm437_vm10, %v1342_v28 }
0x14e9   :  { %2573 = vmatpush3.bf16.xpose.msra.mxu0 %v1406_v29  ;;  %2574 = vmatprep.mubr.msk.bf16.mxu0 %vm2776_vm3, %v2775_v48 }
0x14ea   :  { %2584 = vmatprep.subr.bf16.mxu0 %v2775_v48 }
0x14f0   :  { %2575 = vmatmul.mubr.msk.bf16.vlgmr.msra.gmra.mxu0 %vm375_vm6, %v1398_v32 }
0x14f1   :  { %2585 = vmatpush3.bf16.xpose.msra.mxu0 %v1524_v33  ;;  %2586 = vmatprep.mubr.msk.bf16.mxu0 %vm2776_vm3, %v2775_v48  ;;  %v2697_v33 = vld [vmem:[%s3400_s9 + $0x18] sm:$0xff]  }
0x14f2   :  { %2596 = vmatprep.subr.bf16.mxu0 %v2775_v48 }
0x14f8   :  { %2587 = vmatmul.mubr.msk.bf16.vlgmr.msra.gmra.mxu0 %vm375_vm6, %v1515_v37 }
0x14f9   :  { %2597 = vmatpush3.bf16.xpose.msra.mxu0 %v1641_v38  ;;  %2598 = vmatprep.mubr.msk.bf16.mxu0 %vm2776_vm3, %v2775_v48 }
0x14fa   :  { %2608 = vmatprep.subr.bf16.mxu0 %v2775_v48 }
0x1500   :  { %2599 = vmatmul.mubr.msk.bf16.vlgmr.msra.gmra.mxu0 %vm375_vm6, %v1633_v39 }
0x1501   :  { %2612 = vmatprep.mubr.msk.bf16.mxu0 %vm2776_vm3, %v2775_v48  ;;  %2609 = vmatpush3.bf16.msra.mxu0 %v2697_v33  ;;  %v2708_v33 = vld [vmem:[%s3403_s15 + $0x40] sm:$0xff]  }
0x1502   :  { %2610 = vmatprep.subr.bf16.mxu0 %v2775_v48 }
0x1505   :  { %2611 = vmatpush3.bf16.msra.mxu0 %v2698_v35 }
0x1506   :  { %2624 = vmatprep.subr.bf16.mxu0 %v2775_v48 }
0x15a8   :  { %v1385_v40 = vpop.f32.mrf.mxu0 }
0x15a9   :  { %1391 = vst.msk [vmem:[#allocation4] sm:$0x1f] %vm488_vm11, %v1385_v40 }
0x15aa   :  { %v2570_v41 = vpop.f32.mrf.mxu0 }
0x15ac   :  { %v1388_v42 = vpop.f32.mrf.mxu0 }
0x15ae   :  { %v2571_v43 = vpop.f32.mrf.mxu0 }
0x15b0   :  { %v1442_v44 = vpop.f32.mrf.mxu0 }
0x15b1   :  { %v1448_v45 = vsel %vm422_vm9, %v1442_v44, -inf }
0x15b2   :  { %1449 = vmax.xlane.f32.xlu0 %v1448_v45  ;;  %v2576_v46 = vpop.f32.mrf.mxu0 }
0x15b4   :  { %v1445_v47 = vpop.f32.mrf.mxu0 }
0x15b6   :  { %v2577_v49 = vpop.f32.mrf.mxu0 }
0x15b8   :  { %v1560_v50 = vpop.f32.mrf.mxu0 }
0x15b9   :  { %v1566_v51 = vsel %vm422_vm9, %v1560_v50, -inf }
0x15ba   :  { %1567 = vmax.xlane.f32.xlu1 %v1566_v51  ;;  %v2588_v52 = vpop.f32.mrf.mxu0 }
0x15bb   :  { %v2338_v52 = vld [vmem:[%s3401_s10 + $0x1] ss:$0 sm:$0xff] }
0x15bc   :  { %v1563_v53 = vpop.f32.mrf.mxu0 }
0x15be   :  { %v2589_v54 = vpop.f32.mrf.mxu0 }
0x15c0   :  { %v1677_v55 = vpop.f32.mrf.mxu0 }
0x15c1   :  { %v1683_v56 = vsel %vm422_vm9, %v1677_v55, -inf }
0x15c2   :  { %1684 = vmax.xlane.f32.xlu0 %v1683_v56  ;;  %v2600_v57 = vpop.f32.mrf.mxu0 }
0x15c4   :  { %v1680_v58 = vpop.f32.mrf.mxu0 }
0x15c6   :  { %v2601_v59 = vpop.f32.mrf.mxu0 }
0x15cb   :  { %1460 = vrot.lane.b32.xlu1 %v3198_v62, %s2782_s5 }
0x163b   :  { %v1450_v60 = vpop.xlane.xlu0 %1449 }
0x163c   :  { %v1451_v61 = vsub.f32 %v1442_v44, %v1450_v60 }
0x163e   :  { %v1452_v63 = vmul.f32 1.442695, %v1451_v61 }
0x1640   :  { %2748 = vpow2.f32 %v1452_v63 }
0x1643   :  { %v1568_v0 = vpop.xlane.xlu1 %1567 }
0x1644   :  { %v1569_v1 = vsub.f32 %v1560_v50, %v1568_v0 }
0x1646   :  { %v1570_v3 = vmul.f32 1.442695, %v1569_v1 }
0x1647   :  { %v1461_v4 = vpop.permute.xlu1 %1460 }
0x1648   :  { %2750 = vpow2.f32 %v1570_v3  ;;  %v1466_v5 = vand.u32 %v1461_v4, %v3011_v18 }
0x164a   :  { %2579 = vmatpush3.bf16.msra.mxu1 %v1466_v5 }
0x164b   :  { %v1685_v6 = vpop.xlane.xlu0 %1684  ;;  %2590 = vmatprep.subr.bf16.mxu1 %v2775_v48 }
0x164c   :  { %v1686_v7 = vsub.f32 %v1677_v55, %v1685_v6 }
0x164d   :  { %v2749_v8 = vpop.eup %2748 }
0x164e   :  { %v1687_v9 = vmul.f32 1.442695, %v1686_v7  ;;  %v1454_v62 = vsel %vm422_vm9, %v2749_v8, 0.0 }
0x164f   :  { %1455 = vadd.xlane.f32.xlu0 %v1454_v62  ;;  %v2701_v62 = vld [vmem:[%s3403_s15 + $0x78] sm:$0xff]  }
0x1650   :  { %2752 = vpow2.f32 %v1687_v9  ;;  %v2700_v9 = vld [vmem:[%s3402_s13 + $0x10] sm:$0xff]  }
0x1655   :  { %v2751_v11 = vpop.eup %2750 }
0x1656   :  { %v1572_v12 = vsel %vm422_vm9, %v2751_v11, 0.0 }
0x1657   :  { %1573 = vadd.xlane.f32.xlu1 %v1572_v12 }
0x165d   :  { %v2753_v13 = vpop.eup %2752 }
0x165e   :  { %v1689_v14 = vsel %vm422_vm9, %v2753_v13, 0.0 }
0x165f   :  { %1690 = vadd.xlane.f32.xlu0 %v1689_v14 }
0x1668   :  { %1695 = vrot.lane.b32.xlu1 %v3203_v2, %s2782_s5 }
0x1675   :  { %1578 = vrot.lane.b32.xlu0 %v3215_v22, %s2777_s28 }
0x16d8   :  { %v1456_v17 = vpop.xlane.xlu0 %1455 }
0x16d9   :  { %2754 = vrcp.f32 %v1456_v17 }
0x16e0   :  { %v1574_v19 = vpop.xlane.xlu1 %1573 }
0x16e1   :  { %2756 = vrcp.f32 %v1574_v19 }
0x16e4   :  { %v1696_v25 = vpop.permute.xlu1 %1695 }
0x16e5   :  { %v1701_v15 = vand.u32 %v1696_v25, %v3011_v18 }
0x16e6   :  { %v2755_v30 = vpop.eup %2754 }
0x16e7   :  { %v1458_v20 = vmul.f32 %v2755_v30, %v2749_v8  ;;  %v2699_v8 = vld [vmem:[%s3402_s13 + $0x18] sm:$0xff]  }
0x16e8   :  { %v1691_v36 = vpop.xlane.xlu0 %1690 }
0x16e9   :  { %2758 = vrcp.f32 %v1691_v36  ;;  %v1459_v23 = vpack.c.bf16 %v1458_v20, %v1458_v20  ;;  %v2341_v36 = vld [vmem:[%s3404_s11 + $0x1] ss:$0 sm:$0xff] }
0x16eb   :  { %2581 = vmatmul.mubr.msk.bf16.vlgmr.msra.gmra.mxu1 %vm437_vm10, %v1459_v23 }
0x16ec   :  { %v1579_v10 = vpop.permute.xlu0 %1578  ;;  %2592 = vmatprep.mubr.msk.bf16.mxu1 %vm2776_vm3, %v2775_v48 }
0x16ed   :  { %v1584_v2 = vand.u32 %v1579_v10, %v3011_v18 }
0x16ee   :  { %v2757_v24 = vpop.eup %2756 }
0x16ef   :  { %2591 = vmatpush3.bf16.msra.mxu1 %v1584_v2  ;;  %v1576_v22 = vmul.f32 %v2757_v24, %v2751_v11  ;;  %v2342_v24 = vld [vmem:[%s3405_s12 + $0x1] ss:$0 sm:$0xff] }
0x16f0   :  { %2602 = vmatprep.subr.bf16.mxu1 %v2775_v48 }
0x16f1   :  { %v1577_v26 = vpack.c.bf16 %v1576_v22, %v1576_v22 }
0x16f3   :  { %2593 = vmatmul.mubr.msk.bf16.vlgmr.msra.gmra.mxu1 %vm437_vm10, %v1577_v26 }
0x16f4   :  { %2603 = vmatpush3.bf16.msra.mxu1 %v1701_v15  ;;  %2604 = vmatprep.mubr.msk.bf16.mxu1 %vm2776_vm3, %v2775_v48 }
0x16f5   :  { %2616 = vmatprep.subr.bf16.mxu1 %v2775_v48 }
0x16f6   :  { %v2759_v27 = vpop.eup %2758 }
0x16f7   :  { %v1693_v28 = vmul.f32 %v2759_v27, %v2753_v13  ;;  %v2702_v27 = vld [vmem:[%s3403_s15 + $0x70] sm:$0xff]  }
0x16f9   :  { %v1694_v29 = vpack.c.bf16 %v1693_v28, %v1693_v28  ;;  %v2703_v28 = vld [vmem:[%s3403_s15 + $0x68] sm:$0xff]  }
0x16fb   :  { %2605 = vmatmul.mubr.msk.bf16.vlgmr.msra.gmra.mxu1 %vm437_vm10, %v1694_v29  ;;  %v2704_v29 = vld [vmem:[%s3403_s15 + $0x60] sm:$0xff]  }
0x16fc   :  { %2620 = vmatprep.mubr.msk.bf16.mxu1 %vm2776_vm3, %v2775_v48  ;;  %2617 = vmatpush3.bf16.msra.mxu1 %v2699_v8 }
0x16fd   :  { %2618 = vmatprep.subr.bf16.mxu1 %v2775_v48 }
0x1700   :  { %2619 = vmatpush3.bf16.msra.mxu1 %v2700_v9 }
0x1701   :  { %2644 = vmatprep.subr.bf16.mxu1 %v2775_v48 }
0x17ab   :  { %v1502_v31 = vpop.f32.mrf.mxu1 }
0x17ac   :  { %1509 = vrot.lane.b32.xlu1 %v1502_v31, %s3440_s8  ;;  %v2705_v31 = vld [vmem:[%s3403_s15 + $0x58] sm:$0xff]  }
0x17ad   :  { %v2582_v18 = vpop.f32.mrf.mxu1 }
0x17ae   :  { %v2706_v18 = vld [vmem:[%s3403_s15 + $0x50] sm:$0xff]  }
0x17af   :  { %v1505_v32 = vpop.f32.mrf.mxu1 }
0x17b0   :  { %v2707_v32 = vld [vmem:[%s3403_s15 + $0x48] sm:$0xff]  }
0x17b1   :  { %v2583_v34 = vpop.f32.mrf.mxu1 }
0x17b2   :  { %v2348_v34 = vld [vmem:[%s3406_s14 + $0x1] ss:$0 sm:$0xff] }
0x17b3   :  { %v1620_v37 = vpop.f32.mrf.mxu1 }
0x17b4   :  { %1626 = vst.msk [vmem:[#allocation4 + $0x5] sm:$0x1f] %vm488_vm11, %v1620_v37 }
0x17b5   :  { %v2594_v38 = vpop.f32.mrf.mxu1 }
0x17b7   :  { %v1623_v39 = vpop.f32.mrf.mxu1 }
0x17b9   :  { %v2595_v40 = vpop.f32.mrf.mxu1 }
0x17bb   :  { %v1737_v41 = vpop.f32.mrf.mxu1 }
0x17bc   :  { %1744 = vrot.lane.b32.xlu0 %v1737_v41, %s3440_s8 }
0x17bd   :  { %v2606_v42 = vpop.f32.mrf.mxu1 }
0x17bf   :  { %v1740_v43 = vpop.f32.mrf.mxu1 }
0x17c1   :  { %v2607_v44 = vpop.f32.mrf.mxu1 }
0x181e   :  { %v1510_v45 = vpop.permute.xlu1 %1509 }
0x181f   :  { %1512 = vst.msk [vmem:[#allocation4] sm:$0x1f] %vm610_vm12, %v1510_v45 }
0x182e   :  { %v1745_v46 = vpop.permute.xlu0 %1744 }
0x182f   :  { %1747 = vst.msk [vmem:[#allocation4 + $0x5] sm:$0x1f] %vm610_vm12, %v1745_v46 }
0x1836   :  { %v1748_v47 = vld [vmem:[#allocation4] sm:$0xff]  ;;  %v1749_v49 = vld [vmem:[#allocation4 + $0x8] sm:$0x3] }
0x1837   :  { %v1755_v50 = vpack.c.bf16 %v1749_v49, %v1748_v47 }
0x1839   :  { %2613 = vmatmul.mubr.msk.bf16.vlgmr.msra.gmra.mxu0 %vm251_vm1, %v1755_v50 }
0x183a   :  { %2640 = vmatprep.mubr.msk.bf16.mxu0 %vm2776_vm3, %v2775_v48  ;;  %2625 = vmatpush3.bf16.msra.mxu0 %v2701_v62 }
0x183b   :  { %2626 = vmatprep.subr.bf16.mxu0 %v2775_v48 }
0x183e   :  { %2627 = vmatpush3.bf16.msra.mxu0 %v2702_v27 }
0x183f   :  { %2628 = vmatprep.subr.bf16.mxu0 %v2775_v48 }
0x1842   :  { %2629 = vmatpush3.bf16.msra.mxu0 %v2703_v28 }
0x1843   :  { %2630 = vmatprep.subr.bf16.mxu0 %v2775_v48 }
0x1846   :  { %2631 = vmatpush3.bf16.msra.mxu0 %v2704_v29  ;;  %v2711_v29 = vld [vmem:[%s3411_s21] sm:$0x1f]  }
0x1847   :  { %2632 = vmatprep.subr.bf16.mxu0 %v2775_v48 }
0x184a   :  { %2633 = vmatpush3.bf16.msra.mxu0 %v2705_v31  ;;  %v2214_v31 = vsel %vm2212_vm14, %v2711_v29, 0 }
0x184b   :  { %2634 = vmatprep.subr.bf16.mxu0 %v2775_v48 }
0x184e   :  { %2635 = vmatpush3.bf16.msra.mxu0 %v2706_v18  ;;  %v28_v18 = vstv %s3412_s22 }
0x184f   :  { %2636 = vmatprep.subr.bf16.mxu0 %v2775_v48  ;;  %29 = vst [vmem:[#allocation6] sm:$0x1] %v28_v18 }
0x1852   :  { %2637 = vmatpush3.bf16.msra.mxu0 %v2707_v32  ;;  %v2380_v32 = vld [vmem:[%s3413_s20] ss:$0 sm:$0xff] }
0x1853   :  { %2638 = vmatprep.subr.bf16.mxu0 %v2775_v48 }
0x1856   :  { %2639 = vmatpush3.bf16.msra.mxu0 %v2708_v33 }
0x18f9   :  { %v1805_v51 = vpop.f32.mrf.mxu0 }
0x18fa   :  { %v1812_v53 = vadd.f32 %v1805_v51, %v3162_v16 }
0x18fb   :  { %v2614_v54 = vpop.f32.mrf.mxu0 }
0x18fc   :  { %v3288_v55 = vadd.f32 %v2338_v52, %v1812_v53 }
0x18fd   :  { %v1808_v56 = vpop.f32.mrf.mxu0 }
0x18fe   :  { %v1813_v57 = vadd.f32 %v1808_v56, %v3167_v21  ;;  %v1828_v58 = vsel %vm251_vm1, %v3288_v55, 0.0  ;;  %v2377_v56 = vld [vmem:[%s3407_s16 + $0x1] ss:$0 sm:$0xff] }
0x18ff   :  { %1829 = vadd.xlane.f32.xlu1 %v1828_v58  ;;  %v2615_v59 = vpop.f32.mrf.mxu0 }
0x1900   :  { %v3293_v60 = vadd.f32 %v2338_v52, %v1813_v57 }
0x1902   :  { %v1831_v61 = vsel %vm255_vm2, %v3293_v60, 0.0 }
0x1903   :  { %1832 = vadd.xlane.f32.xlu0 %v1831_v61 }
0x1988   :  { %v1830_v63 = vpop.xlane.xlu1 %1829 }
0x1989   :  { %v1834_v0 = vmul.f32 0.03125, %v1830_v63 }
0x198b   :  { %v1836_v16 = vsub.f32 %v3288_v55, %v1834_v0 }
0x198c   :  { %v1833_v1 = vpop.xlane.xlu0 %1832 }
0x198d   :  { %v1835_v3 = vmul.f32 0.03125, %v1833_v1  ;;  %v1838_v4 = vmul.f32 %v1836_v16, %v1836_v16 }
0x198f   :  { %v1837_v21 = vsub.f32 %v3293_v60, %v1835_v3  ;;  %v1840_v5 = vsel %vm251_vm1, %v1838_v4, 0.0 }
0x1990   :  { %1841 = vadd.xlane.f32.xlu0 %v1840_v5 }
0x1991   :  { %v1839_v6 = vmul.f32 %v1837_v21, %v1837_v21 }
0x1993   :  { %v1843_v7 = vsel %vm255_vm2, %v1839_v6, 0.0 }
0x1994   :  { %1844 = vadd.xlane.f32.xlu1 %v1843_v7 }
0x1a19   :  { %v1842_v11 = vpop.xlane.xlu0 %1841 }
0x1a1a   :  { %v1846_v12 = vmul.f32 0.03125, %v1842_v11  ;;  %v2709_v11 = vld [vmem:[%s3408_s19 + $0x8] sm:$0xff]  }
0x1a1c   :  { %v1848_v13 = vadd.f32 1e-06, %v1846_v12  ;;  %v2710_v12 = vld [vmem:[%s3408_s19] sm:$0xff]  }
0x1a1d   :  { %v1845_v14 = vpop.xlane.xlu1 %1844 }
0x1a1e   :  { %2760 = vrsqrt.f32 %v1848_v13  ;;  %v1847_v17 = vmul.f32 0.03125, %v1845_v14 }
0x1a20   :  { %v1849_v19 = vadd.f32 1e-06, %v1847_v17 }
0x1a22   :  { %2762 = vrsqrt.f32 %v1849_v19 }
0x1a2b   :  { %v2761_v30 = vpop.eup %2760 }
0x1a2c   :  { %v1852_v20 = vmul.f32 %v2761_v30, %v1836_v16 }
0x1a2e   :  { %v1860_v2 = vmul.f32 %v2341_v36, %v1852_v20 }
0x1a2f   :  { %v2763_v23 = vpop.eup %2762 }
0x1a30   :  { %v1853_v10 = vmul.f32 %v2763_v23, %v1837_v21  ;;  %v1868_v22 = vadd.f32 %v2342_v24, %v1860_v2  ;;  %v2378_v23 = vld [vmem:[%s3409_s17] ss:$0 sm:$0xff] }
0x1a31   :  { %v2379_v2 = vld [vmem:[%s3410_s18] ss:$0 sm:$0xff] }
0x1a32   :  { %v1861_v25 = vmul.f32 %v2341_v36, %v1853_v10 }
0x1a34   :  { %v1869_v26 = vadd.f32 %v2342_v24, %v1861_v25 }
0x1a36   :  { %v1875_v15 = vpack.c.bf16 %v1869_v26, %v1868_v22 }
0x1a38   :  { %2621 = vmatmul.mubr.msk.bf16.vlgmr.msra.gmra.mxu1 %vm251_vm1, %v1875_v15 }
0x1a39   :  { %2648 = vmatprep.mubr.msk.bf16.mxu1 %vm2776_vm3, %v2775_v48  ;;  %2645 = vmatpush3.bf16.msra.mxu1 %v2709_v11 }
0x1a3a   :  { %2646 = vmatprep.subr.bf16.mxu1 %v2775_v48 }
0x1a3d   :  { %2647 = vmatpush3.bf16.msra.mxu1 %v2710_v12 }
0x1a3e   :  { %2652 = vmatprep.subr.bf16.mxu1 %v2775_v48 }
0x1af8   :  { %v1933_v35 = vpop.f32.mrf.mxu1 }
0x1af9   :  { %v1934_v37 = vadd.f32 %v2348_v34, %v1933_v35 }
0x1afa   :  { %v2622_v38 = vpop.f32.mrf.mxu1 }
0x1afb   :  { %v1942_v39 = vmul.f32 0.70710677, %v1934_v37  ;;  %v1940_v47 = vmul.f32 0.5, %v1934_v37 }
0x1afc   :  { %v1936_v40 = vpop.f32.mrf.mxu1 }
0x1afd   :  { %2764 = verf.f32 %v1942_v39  ;;  %v1937_v41 = vadd.f32 %v2348_v34, %v1936_v40 }
0x1afe   :  { %v2623_v42 = vpop.f32.mrf.mxu1 }
0x1aff   :  { %v1943_v43 = vmul.f32 0.70710677, %v1937_v41  ;;  %v1941_v49 = vmul.f32 0.5, %v1937_v41 }
0x1b01   :  { %2766 = verf.f32 %v1943_v43 }
0x1b0a   :  { %v2765_v44 = vpop.eup %2764 }
0x1b0b   :  { %v1946_v45 = vadd.f32 1.0, %v2765_v44  ;;  %v2384_v44 = vld [vmem:[#allocation6] ss:$0 sm:$0xff] }
0x1b0d   :  { %v1948_v51 = vmul.f32 %v1946_v45, %v1940_v47 }
0x1b0e   :  { %v2767_v46 = vpop.eup %2766 }
0x1b0f   :  { %v1947_v50 = vadd.f32 1.0, %v2767_v46 }
0x1b11   :  { %v1949_v52 = vmul.f32 %v1947_v50, %v1941_v49 }
0x1b13   :  { %v1967_v53 = vpack.c.bf16 %v1949_v52, %v1948_v51 }
0x1b15   :  { %2641 = vmatmul.mubr.bf16.vlgmr.msra.gmra.mxu0 %v1967_v53 }
0x1bd5   :  { %v2050_v54 = vpop.f32.mrf.mxu0 }
0x1bd6   :  { %v2057_v57 = vadd.f32 %v2050_v54, %v3288_v55 }
0x1bd7   :  { %v2642_v58 = vpop.f32.mrf.mxu0 }
0x1bd8   :  { %v2067_v59 = vadd.f32 %v2377_v56, %v2057_v57 }
0x1bd9   :  { %v2053_v61 = vpop.f32.mrf.mxu0 }
0x1bda   :  { %v2058_v63 = vadd.f32 %v2053_v61, %v3293_v60  ;;  %v2071_v0 = vsel %vm251_vm1, %v2067_v59, 0.0 }
0x1bdb   :  { %2072 = vadd.xlane.f32.xlu0 %v2071_v0  ;;  %v2643_v16 = vpop.f32.mrf.mxu0 }
0x1bdc   :  { %v2068_v1 = vadd.f32 %v2377_v56, %v2058_v63 }
0x1bde   :  { %v2074_v3 = vsel %vm255_vm2, %v2068_v1, 0.0 }
0x1bdf   :  { %2075 = vadd.xlane.f32.xlu0 %v2074_v3 }
0x1c64   :  { %v2073_v4 = vpop.xlane.xlu0 %2072 }
0x1c65   :  { %v2077_v21 = vmul.f32 0.03125, %v2073_v4 }
0x1c67   :  { %v2079_v5 = vsub.f32 %v2067_v59, %v2077_v21 }
0x1c68   :  { %v2076_v6 = vpop.xlane.xlu0 %2075 }
0x1c69   :  { %v2078_v7 = vmul.f32 0.03125, %v2076_v6  ;;  %v2081_v8 = vmul.f32 %v2079_v5, %v2079_v5 }
0x1c6b   :  { %v2080_v55 = vsub.f32 %v2068_v1, %v2078_v7  ;;  %v2083_v9 = vsel %vm251_vm1, %v2081_v8, 0.0 }
0x1c6c   :  { %2084 = vadd.xlane.f32.xlu1 %v2083_v9 }
0x1c6d   :  { %v2082_v62 = vmul.f32 %v2080_v55, %v2080_v55 }
0x1c6f   :  { %v2086_v60 = vsel %vm255_vm2, %v2082_v62, 0.0 }
0x1c70   :  { %2087 = vadd.xlane.f32.xlu1 %v2086_v60 }
0x1cf5   :  { %v2085_v13 = vpop.xlane.xlu1 %2084 }
0x1cf6   :  { %v2089_v14 = vmul.f32 0.03125, %v2085_v13 }
0x1cf8   :  { %v2091_v17 = vadd.f32 1e-06, %v2089_v14 }
0x1cf9   :  { %v2088_v19 = vpop.xlane.xlu1 %2087 }
0x1cfa   :  { %2768 = vrsqrt.f32 %v2091_v17  ;;  %v2090_v30 = vmul.f32 0.03125, %v2088_v19 }
0x1cfc   :  { %v2092_v20 = vadd.f32 1e-06, %v2090_v30 }
0x1cfe   :  { %2770 = vrsqrt.f32 %v2092_v20 }
0x1d07   :  { %v2769_v36 = vpop.eup %2768 }
0x1d08   :  { %v2095_v10 = vmul.f32 %v2769_v36, %v2079_v5 }
0x1d0a   :  { %v2103_v24 = vmul.f32 %v2378_v23, %v2095_v10 }
0x1d0b   :  { %v2771_v25 = vpop.eup %2770 }
0x1d0c   :  { %v2111_v22 = vadd.f32 %v2379_v2, %v2103_v24 }
0x1d0e   :  { %2113 = vst.msk [vmem:[#allocation2] sm:$0xff] %vm251_vm1, %v2111_v22 }
0x1d15   :  { %v2115_v26 = vld [vmem:[#allocation2] sm:$0x1]  ;;  %v2118_v15 = vld [vmem:[#allocation2 + $0x5] sm:$0x1] }
0x1d16   :  { %2117 = vst.msk [vmem:[#allocation5] sm:$0x1] %vm2116_vm13, %v2115_v26  ;;  %2119 = vst.msk [vmem:[#allocation5 + $0x1] sm:$0x1] %vm2116_vm13, %v2118_v15 }
0x1d1d   :  { %v2120_v27 = vld [vmem:[#allocation5] sm:$0x3] }
0x1d1e   :  { %v2125_v28 = vpack.c.bf16 %v2120_v27, %v2120_v27 }
0x1d20   :  { %2649 = vmatmul.mubr.msk.bf16.vlgmr.msra.gmra.mxu1 %vm251_vm1, %v2125_v28 }
0x1d21   :  { %2654 = vmatprep.mubr.msk.bf16.mxu1 %vm2776_vm3, %v2775_v48  ;;  %2653 = vmatpush3.bf16.msra.mxu1 %v2214_v31 }
0x1de0   :  { %v2182_v33 = vpop.f32.mrf.mxu1 }
0x1de1   :  { %v2183_v34 = vadd.f32 %v2380_v32, %v2182_v33 }
0x1de2   :  { %v2650_v35 = vpop.f32.mrf.mxu1 }
0x1de3   :  { %v2189_v48 = vmul.f32 0.70710677, %v2183_v34  ;;  %v2188_v40 = vmul.f32 0.5, %v2183_v34 }
0x1de4   :  { %v2185_v37 = vpop.f32.mrf.mxu1 }
0x1de5   :  { %2772 = verf.f32 %v2189_v48 }
0x1de6   :  { %v2651_v38 = vpop.f32.mrf.mxu1 }
0x1df2   :  { %v2773_v39 = vpop.eup %2772 }
0x1df3   :  { %v2191_v41 = vadd.f32 1.0, %v2773_v39 }
0x1df5   :  { %v2192_v42 = vmul.f32 %v2191_v41, %v2188_v40 }
0x1df7   :  { %v2195_v43 = vpack.c.bf16 %v2192_v42, %v2192_v42 }
0x1df9   :  { %2655 = vmatmul.mubr.msk.bf16.vlgmr.msra.gmra.mxu1 %vm2208_vm15, %v2195_v43 }
0x1eb9   :  { %v2250_v45 = vpop.f32.mrf.mxu1 }
0x1eba   :  { %v2251_v46 = vadd.f32 %v2384_v44, %v2250_v45 }
0x1ebb   :  { %v2656_v47 = vpop.f32.mrf.mxu1 }
0x1ebc   :  { %2257 = vst.msk [vmem:[%s3414_s23] sm:$0x3] %vm2256_vm0, %v2251_v46 }
0x1ebd   :  { %v2253_v49 = vpop.f32.mrf.mxu1 }
0x1ebf   :  { %v2657_v50 = vpop.f32.mrf.mxu1 }

</bundles_post_ra>
